<compile_context>
chip_gen: v7x
topology: tpu7x:2x2x1
jax: 0.10.0
libtpu: 0.0.40
codegen_flags: <defaults>
</compile_context>

<pallas_src>
import functools

import jax
import jax.numpy as jnp
from jax import lax
from jax.experimental import pallas as pl
from jax.experimental.pallas import tpu as pltpu


def _round_up(x, m):
    return (x + m - 1) // m * m


def _block_kernel(x_ref, w1_ref, b1_ref, w2_ref, b2_ref, w3_ref, b3_ref,
                  *rest, H, W, has_skip_conv):
    if has_skip_conv:
        ws_ref, o_ref, xp_ref, h1_ref, h2_ref = rest
    else:
        o_ref, xp_ref, h1_ref, h2_ref = rest

    S = W + 2                       # padded row stride (left pad + W + right pad)
    L = H * S                       # flattened length covering all output rows
    HW = H * W
    Cin = x_ref.shape[1]
    Cout = o_ref.shape[1]
    PP = xp_ref.shape[1]
    cdt = xp_ref.dtype              # compute dtype for MXU inputs (f32 or bf16)

    # Static, 128-aligned interior store origins.
    ox = _round_up(S, 128)          # xp interior origin = padded pixel (1, 0)
    oh = _round_up(S + 1, 128)      # h1/h2 interior origin = padded pixel (1, 1)
    bx = ox - S                     # lane of xp padded pixel (0, 0)
    bh = oh - (S + 1)               # lane of h  padded pixel (0, 0)
    sfx_x = (ox + L) // 128 * 128   # aligned start of xp suffix zero region
    sfx_h = (oh + L) // 128 * 128

    # --- border-only zeroing (aligned stores; interiors fully rewritten below) ---
    xp_ref[:, :ox] = jnp.zeros((Cin, ox), cdt)
    xp_ref[:, sfx_x:] = jnp.zeros((Cin, PP - sfx_x), cdt)
    for href in (h1_ref, h2_ref):
        href[:, :oh] = jnp.zeros((Cout, oh), cdt)
        href[:, sfx_h:] = jnp.zeros((Cout, PP - sfx_h), cdt)

    # --- place x into the flat-padded buffer: zero cols left/right of each row,
    #     flatten, single aligned (Cin, L) interior store starting at lane ox ---
    x3 = x_ref[0].reshape(Cin, H, W)
    zc = jnp.zeros((Cin, H, 1), x3.dtype)
    xw = jnp.concatenate([zc, x3, zc], axis=2).reshape(Cin, L)
    xp_ref[:, ox:ox + L] = xw.astype(cdt)

    # Valid-column mask over the L flattened output positions: j % S < W.
    col = lax.broadcasted_iota(jnp.int32, (1, L), 1) % S
    valid = col < W

    offs = [kh * S + kw for kh in range(3) for kw in range(3)]

    def conv3x3(src_ref, base, w_ref, b_ref):
        # 9 accumulating K=C matmuls (one per tap): no (9C, L) patch transient,
        # narrow-dtype MXU inputs, f32 accumulation, f32 bias.
        acc = jnp.zeros((Cout, L), jnp.float32)
        for t, o in enumerate(offs):
            tap = src_ref[:, base + o:base + o + L]
            acc = acc + jnp.dot(w_ref[t], tap,
                                preferred_element_type=jnp.float32)
        return acc + b_ref[...]

    # conv1 + ReLU -> h1 interior (aligned store; wrap columns masked to 0 --
    # they land exactly on h1's padding lanes).
    r1 = conv3x3(xp_ref, bx, w1_ref, b1_ref)
    h1_ref[:, oh:oh + L] = jnp.where(valid, jnp.maximum(r1, 0.0), 0.0).astype(cdt)

    # conv2 + ReLU -> h2 interior.
    r2 = conv3x3(h1_ref, bh, w2_ref, b2_ref)
    h2_ref[:, oh:oh + L] = jnp.where(valid, jnp.maximum(r2, 0.0), 0.0).astype(cdt)

    # conv3 -> compact to (Cout, H*W) (drop the 2 wrap columns per row),
    # then skip + ReLU in f32.
    r3 = conv3x3(h2_ref, bh, w3_ref, b3_ref)
    r3c = r3.reshape(Cout, H, S)[:, :, :W].reshape(Cout, HW)

    x_flat = x_ref[0]                                  # (Cin, HW), input precision
    if has_skip_conv:
        skip = jnp.dot(ws_ref[...], x_flat.astype(ws_ref.dtype),
                       preferred_element_type=jnp.float32)
    else:
        skip = x_flat.astype(jnp.float32)              # identity (Cin == Cout)
    o_ref[0] = jnp.maximum(r3c + skip, 0.0).astype(o_ref.dtype)


def block_pallas(x_nchw, params, compute_dtype=jnp.bfloat16):
    N, Cin, H, W = x_nchw.shape
    Cout = params["b1"].shape[0]
    has_skip = "ws" in params
    HW = H * W
    S = W + 2
    ox = _round_up(S, 128)
    oh = _round_up(S + 1, 128)
    # Buffer width: base + full padded image + 2 slack lanes read by the last
    # (masked) tap positions, rounded to a lane multiple.
    PP = _round_up(max(ox - S, oh - (S + 1)) + (H + 2) * S + 2, 128)

    cdt = compute_dtype
    x_flat = x_nchw.reshape(N, Cin, HW)

    def prep_w(w):                  # (3,3,Ci,Co) -> (9, Co, Ci), tap-major (kh,kw)
        ci = w.shape[2]
        return jnp.transpose(w.reshape(9, ci, Cout), (0, 2, 1)).astype(cdt)

    w1 = prep_w(params["w1"])
    w2 = prep_w(params["w2"])
    w3 = prep_w(params["w3"])
    b1 = params["b1"].reshape(Cout, 1).astype(jnp.float32)
    b2 = params["b2"].reshape(Cout, 1).astype(jnp.float32)
    b3 = params["b3"].reshape(Cout, 1).astype(jnp.float32)

    inputs = [x_flat, w1, b1, w2, b2, w3, b3]
    in_specs = [
        pl.BlockSpec((1, Cin, HW), lambda n: (n, 0, 0)),
        pl.BlockSpec((9, Cout, Cin), lambda n: (0, 0, 0)),
        pl.BlockSpec((Cout, 1), lambda n: (0, 0)),
        pl.BlockSpec((9, Cout, Cout), lambda n: (0, 0, 0)),
        pl.BlockSpec((Cout, 1), lambda n: (0, 0)),
        pl.BlockSpec((9, Cout, Cout), lambda n: (0, 0, 0)),
        pl.BlockSpec((Cout, 1), lambda n: (0, 0)),
    ]
    if has_skip:
        inputs.append(params["ws"].astype(cdt))          # (Cout, Cin)
        in_specs.append(pl.BlockSpec((Cout, Cin), lambda n: (0, 0)))

    flops = 2 * N * HW * (9 * Cin * Cout + 2 * 9 * Cout * Cout
                          + (Cin * Cout if has_skip else 0))
    bytes_accessed = int(
        x_flat.size * x_flat.dtype.itemsize
        + N * Cout * HW * x_nchw.dtype.itemsize
        + sum(int(a.size) * a.dtype.itemsize for a in inputs[1:]))

    kern = functools.partial(_block_kernel, H=H, W=W, has_skip_conv=has_skip)
    out_flat = pl.pallas_call(
        kern,
        out_shape=jax.ShapeDtypeStruct((N, Cout, HW), x_nchw.dtype),
        grid=(N,),
        in_specs=in_specs,
        out_specs=pl.BlockSpec((1, Cout, HW), lambda n: (n, 0, 0)),
        scratch_shapes=[
            pltpu.VMEM((Cin, PP), cdt),    # flat-padded x
            pltpu.VMEM((Cout, PP), cdt),   # flat-padded h1
            pltpu.VMEM((Cout, PP), cdt),   # flat-padded h2
        ],
        compiler_params=pltpu.CompilerParams(
            dimension_semantics=("parallel",)),
        cost_estimate=pl.CostEstimate(flops=flops, transcendentals=0,
                                      bytes_accessed=bytes_accessed),
    )(*inputs)
    return out_flat.reshape(N, Cout, H, W)


block_forward = jax.jit(block_pallas, static_argnames=("compute_dtype",))


def init_block_params(key, n_in, n_out):
    ks = jax.random.split(key, 7)
    scale = 0.1
    params = {
        "w1": scale * jax.random.normal(ks[0], (3, 3, n_in, n_out), jnp.float32),
        "b1": scale * jax.random.normal(ks[1], (n_out,), jnp.float32),
        "w2": scale * jax.random.normal(ks[2], (3, 3, n_out, n_out), jnp.float32),
        "b2": scale * jax.random.normal(ks[3], (n_out,), jnp.float32),
        "w3": scale * jax.random.normal(ks[4], (3, 3, n_out, n_out), jnp.float32),
        "b3": scale * jax.random.normal(ks[5], (n_out,), jnp.float32),
    }
    if n_in != n_out:
        # PyTorch Conv2d(n_in, n_out, 1, bias=False) weight, squeezed: (Co, Ci)
        params["ws"] = scale * jax.random.normal(ks[6], (n_out, n_in), jnp.float32)
    # n_in == n_out -> nn.Identity(): no "ws" param, kernel adds x directly.
    return params


def block_forward_ref(x_nchw, params):
    # Pure-JAX reference (lax conv, NCHW) for correctness checking.
    Cout = params["b1"].shape[0]
    dn = ("NCHW", "HWIO", "NCHW")

    def c3(h, w, b):
        return lax.conv_general_dilated(h, w, (1, 1), "SAME",
                                        dimension_numbers=dn) + b.reshape(1, Cout, 1, 1)

    h = jax.nn.relu(c3(x_nchw, params["w1"], params["b1"]))
    h = jax.nn.relu(c3(h, params["w2"], params["b2"]))
    h = c3(h, params["w3"], params["b3"])
    if "ws" in params:
        skip = jnp.einsum("nchw,dc->ndhw", x_nchw, params["ws"])
    else:
        skip = x_nchw
    return jax.nn.relu(h + skip)


if __name__ == "__main__":
    key = jax.random.PRNGKey(0)
    k_x1, k_p1, k_x2, k_p2 = jax.random.split(key, 4)

    # Case 1: n_in != n_out (1x1 skip conv), exact f32 compute path.
    x1 = jax.random.normal(k_x1, (2, 4, 16, 16), jnp.float32)   # NCHW
    p1 = init_block_params(k_p1, 4, 8)
    out1 = jax.block_until_ready(block_forward(x1, p1, compute_dtype=jnp.float32))
    ref1 = block_forward_ref(x1, p1)
    assert out1.shape == (2, 8, 16, 16)
    assert jnp.allclose(out1, ref1, atol=1e-3, rtol=1e-3), \
        float(jnp.max(jnp.abs(out1 - ref1)))

    # Case 2: n_in == n_out (identity skip), exact f32 compute path.
    x2 = jax.random.normal(k_x2, (2, 8, 16, 16), jnp.float32)
    p2 = init_block_params(k_p2, 8, 8)
    out2 = jax.block_until_ready(block_forward(x2, p2, compute_dtype=jnp.float32))
    ref2 = block_forward_ref(x2, p2)
    assert out2.shape == (2, 8, 16, 16)
    assert jnp.allclose(out2, ref2, atol=1e-3, rtol=1e-3), \
        float(jnp.max(jnp.abs(out2 - ref2)))

    # Case 3: default bf16 compute path (bf16 MXU inputs, f32 accumulation);
    # looser tolerance reflects bf16 rounding of matmul inputs vs f32 reference.
    out3 = jax.block_until_ready(block_forward(x1, p1))
    assert out3.shape == (2, 8, 16, 16)
    assert jnp.allclose(out3, ref1, atol=5e-2, rtol=5e-2), \
        float(jnp.max(jnp.abs(out3 - ref1)))

    print("KERNEL_OK")
</pallas_src>

<mosaic_0001>
module attributes {stable_mosaic.version = 11 : i64} {
  func.func @_block_kernel(%arg0: i32, %arg1: memref<1x4x256xf32, #tpu.memory_space<vmem>>, %arg2: memref<9x8x4xf32, #tpu.memory_space<vmem>>, %arg3: memref<8x1xf32, #tpu.memory_space<vmem>>, %arg4: memref<9x8x8xf32, #tpu.memory_space<vmem>>, %arg5: memref<8x1xf32, #tpu.memory_space<vmem>>, %arg6: memref<9x8x8xf32, #tpu.memory_space<vmem>>, %arg7: memref<8x1xf32, #tpu.memory_space<vmem>>, %arg8: memref<8x4xf32, #tpu.memory_space<vmem>>, %arg9: memref<1x8x256xf32, #tpu.memory_space<vmem>>, %arg10: memref<4x512xf32, #tpu.memory_space<vmem>>, %arg11: memref<8x512xf32, #tpu.memory_space<vmem>>, %arg12: memref<8x512xf32, #tpu.memory_space<vmem>>) attributes {dimension_semantics = [#tpu.dimension_semantics<parallel>], iteration_bounds = array<i64: 2>, scalar_prefetch = 0 : i64, scratch_operands = 3 : i64, tpu.core_type = #tpu.core_type<tc>, window_params = [{transform_indices = @transform_0, window_bounds = array<i64: 1, 4, 256>}, {pipeline_mode = #tpu.pipeline_mode<synchronous>, transform_indices = @transform_1, window_bounds = array<i64: 9, 8, 4>}, {pipeline_mode = #tpu.pipeline_mode<synchronous>, transform_indices = @transform_2, window_bounds = array<i64: 8, 1>}, {pipeline_mode = #tpu.pipeline_mode<synchronous>, transform_indices = @transform_3, window_bounds = array<i64: 9, 8, 8>}, {pipeline_mode = #tpu.pipeline_mode<synchronous>, transform_indices = @transform_4, window_bounds = array<i64: 8, 1>}, {pipeline_mode = #tpu.pipeline_mode<synchronous>, transform_indices = @transform_5, window_bounds = array<i64: 9, 8, 8>}, {pipeline_mode = #tpu.pipeline_mode<synchronous>, transform_indices = @transform_6, window_bounds = array<i64: 8, 1>}, {pipeline_mode = #tpu.pipeline_mode<synchronous>, transform_indices = @transform_7, window_bounds = array<i64: 8, 4>}, {transform_indices = @transform_8, window_bounds = array<i64: 1, 8, 256>}]} {
    %cst = arith.constant 0.000000e+00 : f32
    %0 = vector.broadcast %cst : f32 to vector<4x128xf32>
    %c0 = arith.constant 0 : index
    %c0_0 = arith.constant 0 : index
    %1 = vector.load %arg10[%c0, %c0_0] : memref<4x512xf32, #tpu.memory_space<vmem>>, vector<4x128xf32>
    tpu.vector_store %arg10[%c0, %c0_0], %0 {strides = array<i32>} : memref<4x512xf32, #tpu.memory_space<vmem>>, vector<4x128xf32>,
    %cst_1 = arith.constant 0.000000e+00 : f32
    %2 = vector.broadcast %cst_1 : f32 to vector<4x128xf32>
    %c0_2 = arith.constant 0 : index
    %c384 = arith.constant 384 : index
    %3 = vector.load %arg10[%c0_2, %c384] : memref<4x512xf32, #tpu.memory_space<vmem>>, vector<4x128xf32>
    tpu.vector_store %arg10[%c0_2, %c384], %2 {strides = array<i32>} : memref<4x512xf32, #tpu.memory_space<vmem>>, vector<4x128xf32>,
    %cst_3 = arith.constant 0.000000e+00 : f32
    %4 = vector.broadcast %cst_3 : f32 to vector<8x128xf32>
    %c0_4 = arith.constant 0 : index
    %c0_5 = arith.constant 0 : index
    %5 = vector.load %arg11[%c0_4, %c0_5] : memref<8x512xf32, #tpu.memory_space<vmem>>, vector<8x128xf32>
    tpu.vector_store %arg11[%c0_4, %c0_5], %4 {strides = array<i32>} : memref<8x512xf32, #tpu.memory_space<vmem>>, vector<8x128xf32>,
    %cst_6 = arith.constant 0.000000e+00 : f32
    %6 = vector.broadcast %cst_6 : f32 to vector<8x128xf32>
    %c0_7 = arith.constant 0 : index
    %c384_8 = arith.constant 384 : index
    %7 = vector.load %arg11[%c0_7, %c384_8] : memref<8x512xf32, #tpu.memory_space<vmem>>, vector<8x128xf32>
    tpu.vector_store %arg11[%c0_7, %c384_8], %6 {strides = array<i32>} : memref<8x512xf32, #tpu.memory_space<vmem>>, vector<8x128xf32>,
    %cst_9 = arith.constant 0.000000e+00 : f32
    %8 = vector.broadcast %cst_9 : f32 to vector<8x128xf32>
    %c0_10 = arith.constant 0 : index
    %c0_11 = arith.constant 0 : index
    %9 = vector.load %arg12[%c0_10, %c0_11] : memref<8x512xf32, #tpu.memory_space<vmem>>, vector<8x128xf32>
    tpu.vector_store %arg12[%c0_10, %c0_11], %8 {strides = array<i32>} : memref<8x512xf32, #tpu.memory_space<vmem>>, vector<8x128xf32>,
    %cst_12 = arith.constant 0.000000e+00 : f32
    %10 = vector.broadcast %cst_12 : f32 to vector<8x128xf32>
    %c0_13 = arith.constant 0 : index
    %c384_14 = arith.constant 384 : index
    %11 = vector.load %arg12[%c0_13, %c384_14] : memref<8x512xf32, #tpu.memory_space<vmem>>, vector<8x128xf32>
    tpu.vector_store %arg12[%c0_13, %c384_14], %10 {strides = array<i32>} : memref<8x512xf32, #tpu.memory_space<vmem>>, vector<8x128xf32>,
    %c0_15 = arith.constant 0 : index
    %c0_16 = arith.constant 0 : index
    %c0_17 = arith.constant 0 : index
    %12 = vector.load %arg1[%c0_15, %c0_16, %c0_17] : memref<1x4x256xf32, #tpu.memory_space<vmem>>, vector<1x4x256xf32>
    %13 = vector.shape_cast %12 : vector<1x4x256xf32> to vector<4x256xf32>
    %14 = vector.shape_cast %13 : vector<4x256xf32> to vector<4x16x16xf32>
    %cst_18 = arith.constant 0.000000e+00 : f32
    %15 = vector.broadcast %cst_18 : f32 to vector<4x16x1xf32>
    %16 = tpu.concatenate %15, %14, %15 in 2 : vector<4x16x1xf32>, vector<4x16x16xf32>, vector<4x16x1xf32> -> vector<4x16x18xf32>
    %17 = vector.shape_cast %16 : vector<4x16x18xf32> to vector<4x288xf32>
    %c0_19 = arith.constant 0 : index
    %c128 = arith.constant 128 : index
    %18 = vector.load %arg10[%c0_19, %c128] : memref<4x512xf32, #tpu.memory_space<vmem>>, vector<4x288xf32>
    tpu.vector_store %arg10[%c0_19, %c128], %17 {strides = array<i32>} : memref<4x512xf32, #tpu.memory_space<vmem>>, vector<4x288xf32>,
    %19 = tpu.iota {dimensions = array<i32: 1>} : vector<1x288xi32>
    %c18_i32 = arith.constant 18 : i32
    %c0_i32 = arith.constant 0 : i32
    %20 = arith.cmpi eq, %c18_i32, %c0_i32 : i32
    %c1_i32 = arith.constant 1 : i32
    %21 = arith.select %20, %c1_i32, %c18_i32 : i32
    %22 = vector.broadcast %21 : i32 to vector<1x288xi32>
    %23 = arith.remsi %19, %22 : vector<1x288xi32>
    %c0_i32_20 = arith.constant 0 : i32
    %24 = vector.broadcast %c0_i32_20 : i32 to vector<1x288xi32>
    %25 = arith.cmpi ne, %23, %24 : vector<1x288xi32>
    %c0_i32_21 = arith.constant 0 : i32
    %26 = vector.broadcast %c0_i32_21 : i32 to vector<1x288xi32>
    %27 = arith.cmpi slt, %23, %26 : vector<1x288xi32>
    %c0_i32_22 = arith.constant 0 : i32
    %28 = arith.cmpi slt, %21, %c0_i32_22 : i32
    %29 = vector.broadcast %28 : i1 to vector<1x288xi1>
    %30 = vector.broadcast %29 : vector<1x288xi1> to vector<1x288xi1>
    %31 = arith.xori %27, %30 : vector<1x288xi1>
    %32 = arith.andi %31, %25 : vector<1x288xi1>
    %33 = vector.broadcast %21 : i32 to vector<1x288xi32>
    %34 = arith.addi %23, %33 : vector<1x288xi32>
    %35 = arith.select %32, %34, %23 : vector<1x288xi1>, vector<1x288xi32>
    %c16_i32 = arith.constant 16 : i32
    %36 = vector.broadcast %c16_i32 : i32 to vector<1x288xi32>
    %37 = arith.cmpi slt, %35, %36 : vector<1x288xi32>
    %cst_23 = arith.constant 0.000000e+00 : f32
    %38 = vector.broadcast %cst_23 : f32 to vector<8x288xf32>
    %c0_24 = arith.constant 0 : index
    %c110 = arith.constant 110 : index
    %39 = vector.load %arg10[%c0_24, %c110] : memref<4x512xf32, #tpu.memory_space<vmem>>, vector<4x288xf32>
    %c0_25 = arith.constant 0 : index
    %c0_26 = arith.constant 0 : index
    %c0_27 = arith.constant 0 : index
    %40 = vector.load %arg2[%c0_25, %c0_26, %c0_27] : memref<9x8x4xf32, #tpu.memory_space<vmem>>, vector<1x8x4xf32>
    %41 = vector.shape_cast %40 : vector<1x8x4xf32> to vector<8x4xf32>
    %cst_28 = arith.constant dense<0.000000e+00> : vector<8x288xf32>
    %42 = tpu.matmul %41, %39, %cst_28 {dimension_numbers = #tpu.dot_dimension_numbers<[1], [0], [0], [1], [0, 0, 1, 1], [], []>} : vector<8x4xf32>, vector<4x288xf32>, vector<8x288xf32> -> vector<8x288xf32>
    %43 = arith.addf %38, %42 : vector<8x288xf32>
    %c0_29 = arith.constant 0 : index
    %c111 = arith.constant 111 : index
    %44 = vector.load %arg10[%c0_29, %c111] : memref<4x512xf32, #tpu.memory_space<vmem>>, vector<4x288xf32>
    %c1 = arith.constant 1 : index
    %c0_30 = arith.constant 0 : index
    %c0_31 = arith.constant 0 : index
    %45 = vector.load %arg2[%c1, %c0_30, %c0_31] : memref<9x8x4xf32, #tpu.memory_space<vmem>>, vector<1x8x4xf32>
    %46 = vector.shape_cast %45 : vector<1x8x4xf32> to vector<8x4xf32>
    %cst_32 = arith.constant dense<0.000000e+00> : vector<8x288xf32>
    %47 = tpu.matmul %46, %44, %cst_32 {dimension_numbers = #tpu.dot_dimension_numbers<[1], [0], [0], [1], [0, 0, 1, 1], [], []>} : vector<8x4xf32>, vector<4x288xf32>, vector<8x288xf32> -> vector<8x288xf32>
    %48 = arith.addf %43, %47 : vector<8x288xf32>
    %c0_33 = arith.constant 0 : index
    %c112 = arith.constant 112 : index
    %49 = vector.load %arg10[%c0_33, %c112] : memref<4x512xf32, #tpu.memory_space<vmem>>, vector<4x288xf32>
    %c2 = arith.constant 2 : index
    %c0_34 = arith.constant 0 : index
    %c0_35 = arith.constant 0 : index
    %50 = vector.load %arg2[%c2, %c0_34, %c0_35] : memref<9x8x4xf32, #tpu.memory_space<vmem>>, vector<1x8x4xf32>
    %51 = vector.shape_cast %50 : vector<1x8x4xf32> to vector<8x4xf32>
    %cst_36 = arith.constant dense<0.000000e+00> : vector<8x288xf32>
    %52 = tpu.matmul %51, %49, %cst_36 {dimension_numbers = #tpu.dot_dimension_numbers<[1], [0], [0], [1], [0, 0, 1, 1], [], []>} : vector<8x4xf32>, vector<4x288xf32>, vector<8x288xf32> -> vector<8x288xf32>
    %53 = arith.addf %48, %52 : vector<8x288xf32>
    %c0_37 = arith.constant 0 : index
    %c128_38 = arith.constant 128 : index
    %54 = vector.load %arg10[%c0_37, %c128_38] : memref<4x512xf32, #tpu.memory_space<vmem>>, vector<4x288xf32>
    %c3 = arith.constant 3 : index
    %c0_39 = arith.constant 0 : index
    %c0_40 = arith.constant 0 : index
    %55 = vector.load %arg2[%c3, %c0_39, %c0_40] : memref<9x8x4xf32, #tpu.memory_space<vmem>>, vector<1x8x4xf32>
    %56 = vector.shape_cast %55 : vector<1x8x4xf32> to vector<8x4xf32>
    %cst_41 = arith.constant dense<0.000000e+00> : vector<8x288xf32>
    %57 = tpu.matmul %56, %54, %cst_41 {dimension_numbers = #tpu.dot_dimension_numbers<[1], [0], [0], [1], [0, 0, 1, 1], [], []>} : vector<8x4xf32>, vector<4x288xf32>, vector<8x288xf32> -> vector<8x288xf32>
    %58 = arith.addf %53, %57 : vector<8x288xf32>
    %c0_42 = arith.constant 0 : index
    %c129 = arith.constant 129 : index
    %59 = vector.load %arg10[%c0_42, %c129] : memref<4x512xf32, #tpu.memory_space<vmem>>, vector<4x288xf32>
    %c4 = arith.constant 4 : index
    %c0_43 = arith.constant 0 : index
    %c0_44 = arith.constant 0 : index
    %60 = vector.load %arg2[%c4, %c0_43, %c0_44] : memref<9x8x4xf32, #tpu.memory_space<vmem>>, vector<1x8x4xf32>
    %61 = vector.shape_cast %60 : vector<1x8x4xf32> to vector<8x4xf32>
    %cst_45 = arith.constant dense<0.000000e+00> : vector<8x288xf32>
    %62 = tpu.matmul %61, %59, %cst_45 {dimension_numbers = #tpu.dot_dimension_numbers<[1], [0], [0], [1], [0, 0, 1, 1], [], []>} : vector<8x4xf32>, vector<4x288xf32>, vector<8x288xf32> -> vector<8x288xf32>
    %63 = arith.addf %58, %62 : vector<8x288xf32>
    %c0_46 = arith.constant 0 : index
    %c130 = arith.constant 130 : index
    %64 = vector.load %arg10[%c0_46, %c130] : memref<4x512xf32, #tpu.memory_space<vmem>>, vector<4x288xf32>
    %c5 = arith.constant 5 : index
    %c0_47 = arith.constant 0 : index
    %c0_48 = arith.constant 0 : index
    %65 = vector.load %arg2[%c5, %c0_47, %c0_48] : memref<9x8x4xf32, #tpu.memory_space<vmem>>, vector<1x8x4xf32>
    %66 = vector.shape_cast %65 : vector<1x8x4xf32> to vector<8x4xf32>
    %cst_49 = arith.constant dense<0.000000e+00> : vector<8x288xf32>
    %67 = tpu.matmul %66, %64, %cst_49 {dimension_numbers = #tpu.dot_dimension_numbers<[1], [0], [0], [1], [0, 0, 1, 1], [], []>} : vector<8x4xf32>, vector<4x288xf32>, vector<8x288xf32> -> vector<8x288xf32>
    %68 = arith.addf %63, %67 : vector<8x288xf32>
    %c0_50 = arith.constant 0 : index
    %c146 = arith.constant 146 : index
    %69 = vector.load %arg10[%c0_50, %c146] : memref<4x512xf32, #tpu.memory_space<vmem>>, vector<4x288xf32>
    %c6 = arith.constant 6 : index
    %c0_51 = arith.constant 0 : index
    %c0_52 = arith.constant 0 : index
    %70 = vector.load %arg2[%c6, %c0_51, %c0_52] : memref<9x8x4xf32, #tpu.memory_space<vmem>>, vector<1x8x4xf32>
    %71 = vector.shape_cast %70 : vector<1x8x4xf32> to vector<8x4xf32>
    %cst_53 = arith.constant dense<0.000000e+00> : vector<8x288xf32>
    %72 = tpu.matmul %71, %69, %cst_53 {dimension_numbers = #tpu.dot_dimension_numbers<[1], [0], [0], [1], [0, 0, 1, 1], [], []>} : vector<8x4xf32>, vector<4x288xf32>, vector<8x288xf32> -> vector<8x288xf32>
    %73 = arith.addf %68, %72 : vector<8x288xf32>
    %c0_54 = arith.constant 0 : index
    %c147 = arith.constant 147 : index
    %74 = vector.load %arg10[%c0_54, %c147] : memref<4x512xf32, #tpu.memory_space<vmem>>, vector<4x288xf32>
    %c7 = arith.constant 7 : index
    %c0_55 = arith.constant 0 : index
    %c0_56 = arith.constant 0 : index
    %75 = vector.load %arg2[%c7, %c0_55, %c0_56] : memref<9x8x4xf32, #tpu.memory_space<vmem>>, vector<1x8x4xf32>
    %76 = vector.shape_cast %75 : vector<1x8x4xf32> to vector<8x4xf32>
    %cst_57 = arith.constant dense<0.000000e+00> : vector<8x288xf32>
    %77 = tpu.matmul %76, %74, %cst_57 {dimension_numbers = #tpu.dot_dimension_numbers<[1], [0], [0], [1], [0, 0, 1, 1], [], []>} : vector<8x4xf32>, vector<4x288xf32>, vector<8x288xf32> -> vector<8x288xf32>
    %78 = arith.addf %73, %77 : vector<8x288xf32>
    %c0_58 = arith.constant 0 : index
    %c148 = arith.constant 148 : index
    %79 = vector.load %arg10[%c0_58, %c148] : memref<4x512xf32, #tpu.memory_space<vmem>>, vector<4x288xf32>
    %c8 = arith.constant 8 : index
    %c0_59 = arith.constant 0 : index
    %c0_60 = arith.constant 0 : index
    %80 = vector.load %arg2[%c8, %c0_59, %c0_60] : memref<9x8x4xf32, #tpu.memory_space<vmem>>, vector<1x8x4xf32>
    %81 = vector.shape_cast %80 : vector<1x8x4xf32> to vector<8x4xf32>
    %cst_61 = arith.constant dense<0.000000e+00> : vector<8x288xf32>
    %82 = tpu.matmul %81, %79, %cst_61 {dimension_numbers = #tpu.dot_dimension_numbers<[1], [0], [0], [1], [0, 0, 1, 1], [], []>} : vector<8x4xf32>, vector<4x288xf32>, vector<8x288xf32> -> vector<8x288xf32>
    %83 = arith.addf %78, %82 : vector<8x288xf32>
    %c0_62 = arith.constant 0 : index
    %c0_63 = arith.constant 0 : index
    %84 = vector.load %arg3[%c0_62, %c0_63] : memref<8x1xf32, #tpu.memory_space<vmem>>, vector<8x1xf32>
    %85 = vector.broadcast %84 : vector<8x1xf32> to vector<8x288xf32>
    %86 = arith.addf %83, %85 : vector<8x288xf32>
    %cst_64 = arith.constant 0.000000e+00 : f32
    %87 = vector.broadcast %cst_64 : f32 to vector<8x288xf32>
    %88 = arith.maximumf %86, %87 : vector<8x288xf32>
    %cst_65 = arith.constant 0.000000e+00 : f32
    %89 = vector.shape_cast %37 : vector<1x288xi1> to vector<1x288xi1>
    %90 = vector.broadcast %89 : vector<1x288xi1> to vector<8x288xi1>
    %91 = vector.broadcast %cst_65 : f32 to vector<8x288xf32>
    %92 = arith.select %90, %88, %91 : vector<8x288xi1>, vector<8x288xf32>
    %c0_66 = arith.constant 0 : index
    %c128_67 = arith.constant 128 : index
    %93 = vector.load %arg11[%c0_66, %c128_67] : memref<8x512xf32, #tpu.memory_space<vmem>>, vector<8x288xf32>
    tpu.vector_store %arg11[%c0_66, %c128_67], %92 {strides = array<i32>} : memref<8x512xf32, #tpu.memory_space<vmem>>, vector<8x288xf32>,
    %cst_68 = arith.constant 0.000000e+00 : f32
    %94 = vector.broadcast %cst_68 : f32 to vector<8x288xf32>
    %c0_69 = arith.constant 0 : index
    %c109 = arith.constant 109 : index
    %95 = vector.load %arg11[%c0_69, %c109] : memref<8x512xf32, #tpu.memory_space<vmem>>, vector<8x288xf32>
    %c0_70 = arith.constant 0 : index
    %c0_71 = arith.constant 0 : index
    %c0_72 = arith.constant 0 : index
    %96 = vector.load %arg4[%c0_70, %c0_71, %c0_72] : memref<9x8x8xf32, #tpu.memory_space<vmem>>, vector<1x8x8xf32>
    %97 = vector.shape_cast %96 : vector<1x8x8xf32> to vector<8x8xf32>
    %cst_73 = arith.constant dense<0.000000e+00> : vector<8x288xf32>
    %98 = tpu.matmul %97, %95, %cst_73 {dimension_numbers = #tpu.dot_dimension_numbers<[1], [0], [0], [1], [0, 0, 1, 1], [], []>} : vector<8x8xf32>, vector<8x288xf32>, vector<8x288xf32> -> vector<8x288xf32>
    %99 = arith.addf %94, %98 : vector<8x288xf32>
    %c0_74 = arith.constant 0 : index
    %c110_75 = arith.constant 110 : index
    %100 = vector.load %arg11[%c0_74, %c110_75] : memref<8x512xf32, #tpu.memory_space<vmem>>, vector<8x288xf32>
    %c1_76 = arith.constant 1 : index
    %c0_77 = arith.constant 0 : index
    %c0_78 = arith.constant 0 : index
    %101 = vector.load %arg4[%c1_76, %c0_77, %c0_78] : memref<9x8x8xf32, #tpu.memory_space<vmem>>, vector<1x8x8xf32>
    %102 = vector.shape_cast %101 : vector<1x8x8xf32> to vector<8x8xf32>
    %cst_79 = arith.constant dense<0.000000e+00> : vector<8x288xf32>
    %103 = tpu.matmul %102, %100, %cst_79 {dimension_numbers = #tpu.dot_dimension_numbers<[1], [0], [0], [1], [0, 0, 1, 1], [], []>} : vector<8x8xf32>, vector<8x288xf32>, vector<8x288xf32> -> vector<8x288xf32>
    %104 = arith.addf %99, %103 : vector<8x288xf32>
    %c0_80 = arith.constant 0 : index
    %c111_81 = arith.constant 111 : index
    %105 = vector.load %arg11[%c0_80, %c111_81] : memref<8x512xf32, #tpu.memory_space<vmem>>, vector<8x288xf32>
    %c2_82 = arith.constant 2 : index
    %c0_83 = arith.constant 0 : index
    %c0_84 = arith.constant 0 : index
    %106 = vector.load %arg4[%c2_82, %c0_83, %c0_84] : memref<9x8x8xf32, #tpu.memory_space<vmem>>, vector<1x8x8xf32>
    %107 = vector.shape_cast %106 : vector<1x8x8xf32> to vector<8x8xf32>
    %cst_85 = arith.constant dense<0.000000e+00> : vector<8x288xf32>
    %108 = tpu.matmul %107, %105, %cst_85 {dimension_numbers = #tpu.dot_dimension_numbers<[1], [0], [0], [1], [0, 0, 1, 1], [], []>} : vector<8x8xf32>, vector<8x288xf32>, vector<8x288xf32> -> vector<8x288xf32>
    %109 = arith.addf %104, %108 : vector<8x288xf32>
    %c0_86 = arith.constant 0 : index
    %c127 = arith.constant 127 : index
    %110 = vector.load %arg11[%c0_86, %c127] : memref<8x512xf32, #tpu.memory_space<vmem>>, vector<8x288xf32>
    %c3_87 = arith.constant 3 : index
    %c0_88 = arith.constant 0 : index
    %c0_89 = arith.constant 0 : index
    %111 = vector.load %arg4[%c3_87, %c0_88, %c0_89] : memref<9x8x8xf32, #tpu.memory_space<vmem>>, vector<1x8x8xf32>
    %112 = vector.shape_cast %111 : vector<1x8x8xf32> to vector<8x8xf32>
    %cst_90 = arith.constant dense<0.000000e+00> : vector<8x288xf32>
    %113 = tpu.matmul %112, %110, %cst_90 {dimension_numbers = #tpu.dot_dimension_numbers<[1], [0], [0], [1], [0, 0, 1, 1], [], []>} : vector<8x8xf32>, vector<8x288xf32>, vector<8x288xf32> -> vector<8x288xf32>
    %114 = arith.addf %109, %113 : vector<8x288xf32>
    %c0_91 = arith.constant 0 : index
    %c128_92 = arith.constant 128 : index
    %115 = vector.load %arg11[%c0_91, %c128_92] : memref<8x512xf32, #tpu.memory_space<vmem>>, vector<8x288xf32>
    %c4_93 = arith.constant 4 : index
    %c0_94 = arith.constant 0 : index
    %c0_95 = arith.constant 0 : index
    %116 = vector.load %arg4[%c4_93, %c0_94, %c0_95] : memref<9x8x8xf32, #tpu.memory_space<vmem>>, vector<1x8x8xf32>
    %117 = vector.shape_cast %116 : vector<1x8x8xf32> to vector<8x8xf32>
    %cst_96 = arith.constant dense<0.000000e+00> : vector<8x288xf32>
    %118 = tpu.matmul %117, %115, %cst_96 {dimension_numbers = #tpu.dot_dimension_numbers<[1], [0], [0], [1], [0, 0, 1, 1], [], []>} : vector<8x8xf32>, vector<8x288xf32>, vector<8x288xf32> -> vector<8x288xf32>
    %119 = arith.addf %114, %118 : vector<8x288xf32>
    %c0_97 = arith.constant 0 : index
    %c129_98 = arith.constant 129 : index
    %120 = vector.load %arg11[%c0_97, %c129_98] : memref<8x512xf32, #tpu.memory_space<vmem>>, vector<8x288xf32>
    %c5_99 = arith.constant 5 : index
    %c0_100 = arith.constant 0 : index
    %c0_101 = arith.constant 0 : index
    %121 = vector.load %arg4[%c5_99, %c0_100, %c0_101] : memref<9x8x8xf32, #tpu.memory_space<vmem>>, vector<1x8x8xf32>
    %122 = vector.shape_cast %121 : vector<1x8x8xf32> to vector<8x8xf32>
    %cst_102 = arith.constant dense<0.000000e+00> : vector<8x288xf32>
    %123 = tpu.matmul %122, %120, %cst_102 {dimension_numbers = #tpu.dot_dimension_numbers<[1], [0], [0], [1], [0, 0, 1, 1], [], []>} : vector<8x8xf32>, vector<8x288xf32>, vector<8x288xf32> -> vector<8x288xf32>
    %124 = arith.addf %119, %123 : vector<8x288xf32>
    %c0_103 = arith.constant 0 : index
    %c145 = arith.constant 145 : index
    %125 = vector.load %arg11[%c0_103, %c145] : memref<8x512xf32, #tpu.memory_space<vmem>>, vector<8x288xf32>
    %c6_104 = arith.constant 6 : index
    %c0_105 = arith.constant 0 : index
    %c0_106 = arith.constant 0 : index
    %126 = vector.load %arg4[%c6_104, %c0_105, %c0_106] : memref<9x8x8xf32, #tpu.memory_space<vmem>>, vector<1x8x8xf32>
    %127 = vector.shape_cast %126 : vector<1x8x8xf32> to vector<8x8xf32>
    %cst_107 = arith.constant dense<0.000000e+00> : vector<8x288xf32>
    %128 = tpu.matmul %127, %125, %cst_107 {dimension_numbers = #tpu.dot_dimension_numbers<[1], [0], [0], [1], [0, 0, 1, 1], [], []>} : vector<8x8xf32>, vector<8x288xf32>, vector<8x288xf32> -> vector<8x288xf32>
    %129 = arith.addf %124, %128 : vector<8x288xf32>
    %c0_108 = arith.constant 0 : index
    %c146_109 = arith.constant 146 : index
    %130 = vector.load %arg11[%c0_108, %c146_109] : memref<8x512xf32, #tpu.memory_space<vmem>>, vector<8x288xf32>
    %c7_110 = arith.constant 7 : index
    %c0_111 = arith.constant 0 : index
    %c0_112 = arith.constant 0 : index
    %131 = vector.load %arg4[%c7_110, %c0_111, %c0_112] : memref<9x8x8xf32, #tpu.memory_space<vmem>>, vector<1x8x8xf32>
    %132 = vector.shape_cast %131 : vector<1x8x8xf32> to vector<8x8xf32>
    %cst_113 = arith.constant dense<0.000000e+00> : vector<8x288xf32>
    %133 = tpu.matmul %132, %130, %cst_113 {dimension_numbers = #tpu.dot_dimension_numbers<[1], [0], [0], [1], [0, 0, 1, 1], [], []>} : vector<8x8xf32>, vector<8x288xf32>, vector<8x288xf32> -> vector<8x288xf32>
    %134 = arith.addf %129, %133 : vector<8x288xf32>
    %c0_114 = arith.constant 0 : index
    %c147_115 = arith.constant 147 : index
    %135 = vector.load %arg11[%c0_114, %c147_115] : memref<8x512xf32, #tpu.memory_space<vmem>>, vector<8x288xf32>
    %c8_116 = arith.constant 8 : index
    %c0_117 = arith.constant 0 : index
    %c0_118 = arith.constant 0 : index
    %136 = vector.load %arg4[%c8_116, %c0_117, %c0_118] : memref<9x8x8xf32, #tpu.memory_space<vmem>>, vector<1x8x8xf32>
    %137 = vector.shape_cast %136 : vector<1x8x8xf32> to vector<8x8xf32>
    %cst_119 = arith.constant dense<0.000000e+00> : vector<8x288xf32>
    %138 = tpu.matmul %137, %135, %cst_119 {dimension_numbers = #tpu.dot_dimension_numbers<[1], [0], [0], [1], [0, 0, 1, 1], [], []>} : vector<8x8xf32>, vector<8x288xf32>, vector<8x288xf32> -> vector<8x288xf32>
    %139 = arith.addf %134, %138 : vector<8x288xf32>
    %c0_120 = arith.constant 0 : index
    %c0_121 = arith.constant 0 : index
    %140 = vector.load %arg5[%c0_120, %c0_121] : memref<8x1xf32, #tpu.memory_space<vmem>>, vector<8x1xf32>
    %141 = vector.broadcast %140 : vector<8x1xf32> to vector<8x288xf32>
    %142 = arith.addf %139, %141 : vector<8x288xf32>
    %cst_122 = arith.constant 0.000000e+00 : f32
    %143 = vector.broadcast %cst_122 : f32 to vector<8x288xf32>
    %144 = arith.maximumf %142, %143 : vector<8x288xf32>
    %cst_123 = arith.constant 0.000000e+00 : f32
    %145 = vector.shape_cast %37 : vector<1x288xi1> to vector<1x288xi1>
    %146 = vector.broadcast %145 : vector<1x288xi1> to vector<8x288xi1>
    %147 = vector.broadcast %cst_123 : f32 to vector<8x288xf32>
    %148 = arith.select %146, %144, %147 : vector<8x288xi1>, vector<8x288xf32>
    %c0_124 = arith.constant 0 : index
    %c128_125 = arith.constant 128 : index
    %149 = vector.load %arg12[%c0_124, %c128_125] : memref<8x512xf32, #tpu.memory_space<vmem>>, vector<8x288xf32>
    tpu.vector_store %arg12[%c0_124, %c128_125], %148 {strides = array<i32>} : memref<8x512xf32, #tpu.memory_space<vmem>>, vector<8x288xf32>,
    %cst_126 = arith.constant 0.000000e+00 : f32
    %150 = vector.broadcast %cst_126 : f32 to vector<8x288xf32>
    %c0_127 = arith.constant 0 : index
    %c109_128 = arith.constant 109 : index
    %151 = vector.load %arg12[%c0_127, %c109_128] : memref<8x512xf32, #tpu.memory_space<vmem>>, vector<8x288xf32>
    %c0_129 = arith.constant 0 : index
    %c0_130 = arith.constant 0 : index
    %c0_131 = arith.constant 0 : index
    %152 = vector.load %arg6[%c0_129, %c0_130, %c0_131] : memref<9x8x8xf32, #tpu.memory_space<vmem>>, vector<1x8x8xf32>
    %153 = vector.shape_cast %152 : vector<1x8x8xf32> to vector<8x8xf32>
    %cst_132 = arith.constant dense<0.000000e+00> : vector<8x288xf32>
    %154 = tpu.matmul %153, %151, %cst_132 {dimension_numbers = #tpu.dot_dimension_numbers<[1], [0], [0], [1], [0, 0, 1, 1], [], []>} : vector<8x8xf32>, vector<8x288xf32>, vector<8x288xf32> -> vector<8x288xf32>
    %155 = arith.addf %150, %154 : vector<8x288xf32>
    %c0_133 = arith.constant 0 : index
    %c110_134 = arith.constant 110 : index
    %156 = vector.load %arg12[%c0_133, %c110_134] : memref<8x512xf32, #tpu.memory_space<vmem>>, vector<8x288xf32>
    %c1_135 = arith.constant 1 : index
    %c0_136 = arith.constant 0 : index
    %c0_137 = arith.constant 0 : index
    %157 = vector.load %arg6[%c1_135, %c0_136, %c0_137] : memref<9x8x8xf32, #tpu.memory_space<vmem>>, vector<1x8x8xf32>
    %158 = vector.shape_cast %157 : vector<1x8x8xf32> to vector<8x8xf32>
    %cst_138 = arith.constant dense<0.000000e+00> : vector<8x288xf32>
    %159 = tpu.matmul %158, %156, %cst_138 {dimension_numbers = #tpu.dot_dimension_numbers<[1], [0], [0], [1], [0, 0, 1, 1], [], []>} : vector<8x8xf32>, vector<8x288xf32>, vector<8x288xf32> -> vector<8x288xf32>
    %160 = arith.addf %155, %159 : vector<8x288xf32>
    %c0_139 = arith.constant 0 : index
    %c111_140 = arith.constant 111 : index
    %161 = vector.load %arg12[%c0_139, %c111_140] : memref<8x512xf32, #tpu.memory_space<vmem>>, vector<8x288xf32>
    %c2_141 = arith.constant 2 : index
    %c0_142 = arith.constant 0 : index
    %c0_143 = arith.constant 0 : index
    %162 = vector.load %arg6[%c2_141, %c0_142, %c0_143] : memref<9x8x8xf32, #tpu.memory_space<vmem>>, vector<1x8x8xf32>
    %163 = vector.shape_cast %162 : vector<1x8x8xf32> to vector<8x8xf32>
    %cst_144 = arith.constant dense<0.000000e+00> : vector<8x288xf32>
    %164 = tpu.matmul %163, %161, %cst_144 {dimension_numbers = #tpu.dot_dimension_numbers<[1], [0], [0], [1], [0, 0, 1, 1], [], []>} : vector<8x8xf32>, vector<8x288xf32>, vector<8x288xf32> -> vector<8x288xf32>
    %165 = arith.addf %160, %164 : vector<8x288xf32>
    %c0_145 = arith.constant 0 : index
    %c127_146 = arith.constant 127 : index
    %166 = vector.load %arg12[%c0_145, %c127_146] : memref<8x512xf32, #tpu.memory_space<vmem>>, vector<8x288xf32>
    %c3_147 = arith.constant 3 : index
    %c0_148 = arith.constant 0 : index
    %c0_149 = arith.constant 0 : index
    %167 = vector.load %arg6[%c3_147, %c0_148, %c0_149] : memref<9x8x8xf32, #tpu.memory_space<vmem>>, vector<1x8x8xf32>
    %168 = vector.shape_cast %167 : vector<1x8x8xf32> to vector<8x8xf32>
    %cst_150 = arith.constant dense<0.000000e+00> : vector<8x288xf32>
    %169 = tpu.matmul %168, %166, %cst_150 {dimension_numbers = #tpu.dot_dimension_numbers<[1], [0], [0], [1], [0, 0, 1, 1], [], []>} : vector<8x8xf32>, vector<8x288xf32>, vector<8x288xf32> -> vector<8x288xf32>
    %170 = arith.addf %165, %169 : vector<8x288xf32>
    %c0_151 = arith.constant 0 : index
    %c128_152 = arith.constant 128 : index
    %171 = vector.load %arg12[%c0_151, %c128_152] : memref<8x512xf32, #tpu.memory_space<vmem>>, vector<8x288xf32>
    %c4_153 = arith.constant 4 : index
    %c0_154 = arith.constant 0 : index
    %c0_155 = arith.constant 0 : index
    %172 = vector.load %arg6[%c4_153, %c0_154, %c0_155] : memref<9x8x8xf32, #tpu.memory_space<vmem>>, vector<1x8x8xf32>
    %173 = vector.shape_cast %172 : vector<1x8x8xf32> to vector<8x8xf32>
    %cst_156 = arith.constant dense<0.000000e+00> : vector<8x288xf32>
    %174 = tpu.matmul %173, %171, %cst_156 {dimension_numbers = #tpu.dot_dimension_numbers<[1], [0], [0], [1], [0, 0, 1, 1], [], []>} : vector<8x8xf32>, vector<8x288xf32>, vector<8x288xf32> -> vector<8x288xf32>
    %175 = arith.addf %170, %174 : vector<8x288xf32>
    %c0_157 = arith.constant 0 : index
    %c129_158 = arith.constant 129 : index
    %176 = vector.load %arg12[%c0_157, %c129_158] : memref<8x512xf32, #tpu.memory_space<vmem>>, vector<8x288xf32>
    %c5_159 = arith.constant 5 : index
    %c0_160 = arith.constant 0 : index
    %c0_161 = arith.constant 0 : index
    %177 = vector.load %arg6[%c5_159, %c0_160, %c0_161] : memref<9x8x8xf32, #tpu.memory_space<vmem>>, vector<1x8x8xf32>
    %178 = vector.shape_cast %177 : vector<1x8x8xf32> to vector<8x8xf32>
    %cst_162 = arith.constant dense<0.000000e+00> : vector<8x288xf32>
    %179 = tpu.matmul %178, %176, %cst_162 {dimension_numbers = #tpu.dot_dimension_numbers<[1], [0], [0], [1], [0, 0, 1, 1], [], []>} : vector<8x8xf32>, vector<8x288xf32>, vector<8x288xf32> -> vector<8x288xf32>
    %180 = arith.addf %175, %179 : vector<8x288xf32>
    %c0_163 = arith.constant 0 : index
    %c145_164 = arith.constant 145 : index
    %181 = vector.load %arg12[%c0_163, %c145_164] : memref<8x512xf32, #tpu.memory_space<vmem>>, vector<8x288xf32>
    %c6_165 = arith.constant 6 : index
    %c0_166 = arith.constant 0 : index
    %c0_167 = arith.constant 0 : index
    %182 = vector.load %arg6[%c6_165, %c0_166, %c0_167] : memref<9x8x8xf32, #tpu.memory_space<vmem>>, vector<1x8x8xf32>
    %183 = vector.shape_cast %182 : vector<1x8x8xf32> to vector<8x8xf32>
    %cst_168 = arith.constant dense<0.000000e+00> : vector<8x288xf32>
    %184 = tpu.matmul %183, %181, %cst_168 {dimension_numbers = #tpu.dot_dimension_numbers<[1], [0], [0], [1], [0, 0, 1, 1], [], []>} : vector<8x8xf32>, vector<8x288xf32>, vector<8x288xf32> -> vector<8x288xf32>
    %185 = arith.addf %180, %184 : vector<8x288xf32>
    %c0_169 = arith.constant 0 : index
    %c146_170 = arith.constant 146 : index
    %186 = vector.load %arg12[%c0_169, %c146_170] : memref<8x512xf32, #tpu.memory_space<vmem>>, vector<8x288xf32>
    %c7_171 = arith.constant 7 : index
    %c0_172 = arith.constant 0 : index
    %c0_173 = arith.constant 0 : index
    %187 = vector.load %arg6[%c7_171, %c0_172, %c0_173] : memref<9x8x8xf32, #tpu.memory_space<vmem>>, vector<1x8x8xf32>
    %188 = vector.shape_cast %187 : vector<1x8x8xf32> to vector<8x8xf32>
    %cst_174 = arith.constant dense<0.000000e+00> : vector<8x288xf32>
    %189 = tpu.matmul %188, %186, %cst_174 {dimension_numbers = #tpu.dot_dimension_numbers<[1], [0], [0], [1], [0, 0, 1, 1], [], []>} : vector<8x8xf32>, vector<8x288xf32>, vector<8x288xf32> -> vector<8x288xf32>
    %190 = arith.addf %185, %189 : vector<8x288xf32>
    %c0_175 = arith.constant 0 : index
    %c147_176 = arith.constant 147 : index
    %191 = vector.load %arg12[%c0_175, %c147_176] : memref<8x512xf32, #tpu.memory_space<vmem>>, vector<8x288xf32>
    %c8_177 = arith.constant 8 : index
    %c0_178 = arith.constant 0 : index
    %c0_179 = arith.constant 0 : index
    %192 = vector.load %arg6[%c8_177, %c0_178, %c0_179] : memref<9x8x8xf32, #tpu.memory_space<vmem>>, vector<1x8x8xf32>
    %193 = vector.shape_cast %192 : vector<1x8x8xf32> to vector<8x8xf32>
    %cst_180 = arith.constant dense<0.000000e+00> : vector<8x288xf32>
    %194 = tpu.matmul %193, %191, %cst_180 {dimension_numbers = #tpu.dot_dimension_numbers<[1], [0], [0], [1], [0, 0, 1, 1], [], []>} : vector<8x8xf32>, vector<8x288xf32>, vector<8x288xf32> -> vector<8x288xf32>
    %195 = arith.addf %190, %194 : vector<8x288xf32>
    %c0_181 = arith.constant 0 : index
    %c0_182 = arith.constant 0 : index
    %196 = vector.load %arg7[%c0_181, %c0_182] : memref<8x1xf32, #tpu.memory_space<vmem>>, vector<8x1xf32>
    %197 = vector.broadcast %196 : vector<8x1xf32> to vector<8x288xf32>
    %198 = arith.addf %195, %197 : vector<8x288xf32>
    %199 = vector.shape_cast %198 : vector<8x288xf32> to vector<8x16x18xf32>
    %200 = vector.extract_strided_slice %199 {offsets = [0, 0, 0], sizes = [8, 16, 16], strides = [1, 1, 1]} : vector<8x16x18xf32> to vector<8x16x16xf32>
    %201 = vector.shape_cast %200 : vector<8x16x16xf32> to vector<8x256xf32>
    %c0_183 = arith.constant 0 : index
    %c0_184 = arith.constant 0 : index
    %c0_185 = arith.constant 0 : index
    %202 = vector.load %arg1[%c0_183, %c0_184, %c0_185] : memref<1x4x256xf32, #tpu.memory_space<vmem>>, vector<1x4x256xf32>
    %203 = vector.shape_cast %202 : vector<1x4x256xf32> to vector<4x256xf32>
    %c0_186 = arith.constant 0 : index
    %c0_187 = arith.constant 0 : index
    %204 = vector.load %arg8[%c0_186, %c0_187] : memref<8x4xf32, #tpu.memory_space<vmem>>, vector<8x4xf32>
    %cst_188 = arith.constant dense<0.000000e+00> : vector<8x256xf32>
    %205 = tpu.matmul %204, %203, %cst_188 {dimension_numbers = #tpu.dot_dimension_numbers<[1], [0], [0], [1], [0, 0, 1, 1], [], []>} : vector<8x4xf32>, vector<4x256xf32>, vector<8x256xf32> -> vector<8x256xf32>
    %206 = arith.addf %201, %205 : vector<8x256xf32>
    %cst_189 = arith.constant 0.000000e+00 : f32
    %207 = vector.broadcast %cst_189 : f32 to vector<8x256xf32>
    %208 = arith.maximumf %206, %207 : vector<8x256xf32>
    %c0_190 = arith.constant 0 : index
    %c0_191 = arith.constant 0 : index
    %c0_192 = arith.constant 0 : index
    %209 = vector.load %arg9[%c0_190, %c0_191, %c0_192] : memref<1x8x256xf32, #tpu.memory_space<vmem>>, vector<1x8x256xf32>
    %210 = vector.shape_cast %209 : vector<1x8x256xf32> to vector<8x256xf32>
    %211 = vector.shape_cast %208 : vector<8x256xf32> to vector<1x8x256xf32>
    tpu.vector_store %arg9[%c0_190, %c0_191, %c0_192], %211 {strides = array<i32>} : memref<1x8x256xf32, #tpu.memory_space<vmem>>, vector<1x8x256xf32>,
    return
  }
  func.func @transform_0(%arg0: i32) -> (i32, i32, i32) {
    %c0_i32 = arith.constant 0 : i32
    %c0_i32_0 = arith.constant 0 : i32
    %c0_i32_1 = arith.constant 0 : i32
    return %arg0, %c0_i32, %c0_i32_0 : i32, i32, i32
  }
  func.func @transform_1(%arg0: i32) -> (i32, i32, i32) {
    %c0_i32 = arith.constant 0 : i32
    %c0_i32_0 = arith.constant 0 : i32
    %c0_i32_1 = arith.constant 0 : i32
    %c0_i32_2 = arith.constant 0 : i32
    return %c0_i32, %c0_i32_0, %c0_i32_1 : i32, i32, i32
  }
  func.func @transform_2(%arg0: i32) -> (i32, i32) {
    %c0_i32 = arith.constant 0 : i32
    %c0_i32_0 = arith.constant 0 : i32
    %c0_i32_1 = arith.constant 0 : i32
    return %c0_i32, %c0_i32_0 : i32, i32
  }
  func.func @transform_3(%arg0: i32) -> (i32, i32, i32) {
    %c0_i32 = arith.constant 0 : i32
    %c0_i32_0 = arith.constant 0 : i32
    %c0_i32_1 = arith.constant 0 : i32
    %c0_i32_2 = arith.constant 0 : i32
    return %c0_i32, %c0_i32_0, %c0_i32_1 : i32, i32, i32
  }
  func.func @transform_4(%arg0: i32) -> (i32, i32) {
    %c0_i32 = arith.constant 0 : i32
    %c0_i32_0 = arith.constant 0 : i32
    %c0_i32_1 = arith.constant 0 : i32
    return %c0_i32, %c0_i32_0 : i32, i32
  }
  func.func @transform_5(%arg0: i32) -> (i32, i32, i32) {
    %c0_i32 = arith.constant 0 : i32
    %c0_i32_0 = arith.constant 0 : i32
    %c0_i32_1 = arith.constant 0 : i32
    %c0_i32_2 = arith.constant 0 : i32
    return %c0_i32, %c0_i32_0, %c0_i32_1 : i32, i32, i32
  }
  func.func @transform_6(%arg0: i32) -> (i32, i32) {
    %c0_i32 = arith.constant 0 : i32
    %c0_i32_0 = arith.constant 0 : i32
    %c0_i32_1 = arith.constant 0 : i32
    return %c0_i32, %c0_i32_0 : i32, i32
  }
  func.func @transform_7(%arg0: i32) -> (i32, i32) {
    %c0_i32 = arith.constant 0 : i32
    %c0_i32_0 = arith.constant 0 : i32
    %c0_i32_1 = arith.constant 0 : i32
    return %c0_i32, %c0_i32_0 : i32, i32
  }
  func.func @transform_8(%arg0: i32) -> (i32, i32, i32) {
    %c0_i32 = arith.constant 0 : i32
    %c0_i32_0 = arith.constant 0 : i32
    %c0_i32_1 = arith.constant 0 : i32
    return %arg0, %c0_i32, %c0_i32_0 : i32, i32, i32
  }
}

</mosaic_0001>

<bundles_post_ra>
// kernel: block_pallas.1
= control target key start
LH: loop header
LB: loop body
LE: loop exit
PB: predicated region body
PF: predicated region fallthrough
CT: control target
= control target key end

     0   :  { %s6653_s27 = smov 0   ;;  %s7544_s0 = inlined_call_operand.vmem [shape: f32[2,4,256], index: 0, kind: input, shape index: {}]   ;;  %s7545_s1 = inlined_call_operand.vmem [shape: f32[9,8,4], index: 1, kind: input, shape index: {}]   ;;  %s7546_s2 = inlined_call_operand.vmem [shape: f32[8,1], index: 2, kind: input, shape index: {}]   ;;  %s7547_s3 = inlined_call_operand.vmem [shape: f32[9,8,8], index: 3, kind: input, shape index: {}]   ;;  %s7548_s4 = inlined_call_operand.vmem [shape: f32[8,1], index: 4, kind: input, shape index: {}]   ;;  %s7549_s5 = inlined_call_operand.vmem [shape: f32[9,8,8], index: 5, kind: input, shape index: {}]   ;;  %s7550_s6 = inlined_call_operand.vmem [shape: f32[8,1], index: 6, kind: input, shape index: {}]   ;;  %s7551_s7 = inlined_call_operand.vmem [shape: f32[8,4], index: 7, kind: input, shape index: {}]   ;;  %s7552_s8 = inlined_call_operand.vmem [shape: f32[2,8,256], index: 8, kind: output, shape index: {}]  }
   0x1 LB: > { %s6105_s28 = sadd.s32 4294967295, %s6560_s27   ;;  %p6109_p0 = scmp.ge.s32.totalorder %s6560_s27, 1  ;;  %s6560_s27 = sphi %s6653_s27, %s18_s27  }
   0x2   : > { %p262_p1 = scmp.lt.s32.totalorder %s6560_s27, 3 }
   0x4   : > { %p263_p2 = pnand %p6109_p0, %p262_p1 }
   0x5   : > { %p296_p3 = scmp.lt.s32.totalorder (!%p263_p2), %s6105_s28, 1  ;;  %s6562_s11 = smov (!%p263_p2), 80   ;;  %v6569_v2 = vmov (!%p263_p2), 1983009808   ;;  %v355_v4 = vlaneseq (!%p263_p2)  ;;  %v6570_v11 = vmov (!%p263_p2), 1934713408  }
   0x6   : > { %266 = sbr.rel (%p263_p2) target bundleno = 1944 (0x798), region = 52  ;;  %s6563_s12 = smov (!%p263_p2), 112   ;;  %v353_v3 = vunpack.c.l.s4 (!%p263_p2), %v6569_v2  ;;  %v370_v12 = vunpack.c.l.s4 (!%p263_p2), %v6570_v11  ;;  %v6572_v58 = vmov (!%p263_p2), 0.0   ;;  %vm535_vm0 = vcmask (!%p263_p2), 7168  }
   0x7   : > { %s6564_s13 = smov (!%p263_p2), 64   ;;  %s6565_s14 = smov (!%p263_p2), 96   ;;  %v356_v7 = vshrl.u32 (!%p263_p2), %v355_v4, 7  ;;  %306 = vst [vmem:[#allocation2] sm:$0xf] (!%p263_p2), %v6572_v58  ;;  %308 = vst [vmem:[#allocation3] sm:$0xff] (!%p263_p2), %v6572_v58  ;;  %936 = vmatprep.mubr.f32.mxu0 (!%p263_p2), %v6572_v58  ;;  %6300 = vmatprep.subr.mxu1 (!%p263_p2), %v6572_v58 }
   0x8   : > { %s6566_s15 = smov (!%p263_p2), 32   ;;  %s6567_s16 = smov (!%p263_p2), 48   ;;  %v354_v6 = vunpack.c.0.s8 (!%p263_p2), %v353_v3  ;;  %v371_v20 = vunpack.c.0.s8 (!%p263_p2), %v370_v12  ;;  %307 = vst [vmem:[#allocation2 + $0xc] sm:$0xf] (!%p263_p2), %v6572_v58  ;;  %309 = vst [vmem:[#allocation3 + $0x18] sm:$0xff] (!%p263_p2), %v6572_v58  ;;  %vm544_vm1 = vcmask (!%p263_p2), 138240  }
   0x9   : > { %s6568_s17 = smov (!%p263_p2), 16   ;;  %s6571_s18 = smov (!%p263_p2), 1   ;;  %311 = vst [vmem:[#allocation4 + $0x18] sm:$0xff] (!%p263_p2), %v6572_v58  ;;  %vm749_vm2 = vcmask (!%p263_p2), 146432   ;;  %vm751_vm3 = vcmask (!%p263_p2), 293888   ;;  %vm7553_vm4 = vcmask (!%p263_p2), 130048  }
   0xa   : > { %v6678_v13 = vsub.s32 (!%p263_p2), %v354_v6, %v356_v7  ;;  %v6682_v33 = vsub.s32 (!%p263_p2), %v371_v20, %v356_v7  ;;  %s6573_s19 = smov (!%p263_p2), 36   ;;  %s6574_s20 = smov (!%p263_p2), 18   ;;  %vm753_vm5 = vcmask (!%p263_p2), 441344   ;;  %vm765_vm6 = vcmask (!%p263_p2), 277504  }
   0xb   : > { %s6575_s21 = smov (!%p263_p2), 72   ;;  %s6576_s22 = smov (!%p263_p2), 108   ;;  %vm755_vm7 = vcmask (!%p263_p2), 588800   ;;  %vm757_vm8 = vcmask (!%p263_p2), 736256   ;;  %vm767_vm9 = vcmask (!%p263_p2), 424960   ;;  %vm769_vm10 = vcmask (!%p263_p2), 572416  }
   0xc   : > { %s6577_s23 = smov (!%p263_p2), 126   ;;  %s6578_s24 = smov (!%p263_p2), 52   ;;  %vm759_vm11 = vcmask (!%p263_p2), 883712   ;;  %vm771_vm12 = vcmask (!%p263_p2), 719872   ;;  %vm773_vm13 = vcmask (!%p263_p2), 867328   ;;  %vm761_vm14 = vcmask (!%p263_p2), 1031168  }
   0xd   : > { %s7567_s28 = smov (!%p296_p3, %s6105_s28), 1  ;;  %s6579_s25 = smov 54   ;;  %vm775_vm15 = vcmask 1014784  }
   0xe   : > { %s6244_s29 = sshll.u32 %s7567_s28, 3  ;;  %s6580_s26 = smov 88  }
   0xf   : > { %s6667_s10 = scalar_lea.vmem %s7544_s0, %s6244_s29  ;;  %s6581_s29 = smov 90  }
  0x10   : > { %v312_v0 = vld [vmem:[%s6667_s10] sm:$0xff]  ;;  %s6582_s30 = smov 34   ;;  %s6583_s9 = smov 124  }
  0x11   : > { %324 = vrot.lane.b32.xlu1 %v312_v0, %s6562_s11  ;;  %316 = vrot.lane.b32.xlu0 %v312_v0, %s6563_s12  ;;  %v314_v17 = vrot.slane %v312_v0, 4 }
  0x15   : > { %328 = vrot.lane.b32.xlu1 %v312_v0, %s6564_s13  ;;  %320 = vrot.lane.b32.xlu0 %v312_v0, %s6565_s14 }
  0x19   : > { %336 = vrot.lane.b32.xlu1 %v312_v0, %s6566_s15  ;;  %332 = vrot.lane.b32.xlu0 %v312_v0, %s6567_s16 }
  0x1d   : > { %340 = vrot.lane.b32.xlu0 %v312_v0, %s6568_s17 }
  0x83   : > { %v325_v1 = vpop.permute.xlu1 %324  ;;  %v317_v5 = vpop.permute.xlu0 %316 }
  0x84   : > { %v359_v14 = vcombine.low %v317_v5, %v325_v1  ;;  %v326_v24 = vrot.slane %v325_v1, 4  ;;  %v318_v25 = vrot.slane %v317_v5, 4 }
  0x86   : > { %v366_v26 = vrot.slane %v359_v14, %v6678_v13  ;;  %v427_v38 = vcombine.low %v318_v25, %v326_v24 }
  0x87   : > { %v329_v8 = vpop.permute.xlu1 %328  ;;  %v321_v9 = vpop.permute.xlu0 %320 }
  0x88   : > { %v351_v10 = vcombine.low %v312_v0, %v321_v9  ;;  %v322_v18 = vrot.slane %v321_v9, 4  ;;  %v330_v21 = vrot.slane %v329_v8, 4  ;;  %v434_v47 = vrot.slane %v427_v38, %v6678_v13 }
  0x8a   : > { %v358_v19 = vrot.slane %v351_v10, %v6678_v13  ;;  %v419_v32 = vcombine.low %v314_v17, %v322_v18 }
  0x8b   : > { %v337_v15 = vpop.permute.xlu1 %336  ;;  %v333_v16 = vpop.permute.xlu0 %332 }
  0x8c   : > { %v338_v22 = vrot.slane %v337_v15, 4  ;;  %v385_v23 = vcombine.low %v329_v8, %v337_v15  ;;  %v334_v28 = vrot.slane %v333_v16, 4  ;;  %v367_v31 = vcombine.low %v358_v19, %v366_v26 }
  0x8d   : > { %v368_v42 = vcombine.high %v358_v19, %v366_v26  ;;  %v426_v43 = vrot.slane %v419_v32, %v6678_v13 }
  0x8e   : > { %v392_v34 = vrot.slane %v385_v23, %v6678_v13  ;;  %v453_v35 = vcombine.low %v330_v21, %v338_v22  ;;  %v375_v45 = vrot.slane %v367_v31, %v6682_v33 }
  0x8f   : > { %v341_v27 = vpop.permute.xlu0 %340  ;;  %v382_v52 = vrot.slane %v368_v42, %v6682_v33  ;;  %v435_v53 = vcombine.low %v426_v43, %v434_v47  ;;  %v436_v60 = vcombine.high %v426_v43, %v434_v47 }
  0x90   : > { %v342_v29 = vrot.slane %v341_v27, 4  ;;  %v393_v30 = vcombine.low %v333_v16, %v341_v27  ;;  %v460_v44 = vrot.slane %v453_v35, %v6678_v13 }
  0x91   : > { %v443_v59 = vrot.slane %v435_v53, %v6682_v33  ;;  %v450_v0 = vrot.slane %v436_v60, %v6682_v33 }
  0x92   : > { %v400_v36 = vrot.slane %v393_v30, %v6678_v13  ;;  %v461_v37 = vcombine.low %v334_v28, %v342_v29 }
  0x94   : > { %v401_v39 = vcombine.low %v392_v34, %v400_v36  ;;  %v402_v40 = vcombine.high %v392_v34, %v400_v36  ;;  %v468_v41 = vrot.slane %v461_v37, %v6678_v13 }
  0x96   : > { %v409_v46 = vrot.slane %v401_v39, %v6682_v33  ;;  %v416_v50 = vrot.slane %v402_v40, %v6682_v33  ;;  %v469_v51 = vcombine.low %v460_v44, %v468_v41  ;;  %v470_v54 = vcombine.high %v460_v44, %v468_v41 }
  0x98   : > { %v6114_v48 = vcombine.high %v375_v45, %v409_v46  ;;  %v503_v49 = vcombine.low %v375_v45, %v409_v46  ;;  %v6116_v55 = vcombine.high %v382_v52, %v416_v50  ;;  %v507_v56 = vcombine.low %v382_v52, %v416_v50 }
  0x99   : > { %v477_v57 = vrot.slane %v469_v51, %v6682_v33  ;;  %v484_v63 = vrot.slane %v470_v54, %v6682_v33 }
  0x9a   : > { %515 = vrot.lane.b32.xlu0 %v6114_v48, %s6571_s18  ;;  %511 = vrot.lane.b32.xlu1 %v503_v49, %s6571_s18 }
  0x9b   : > { %v6115_v61 = vcombine.high %v443_v59, %v477_v57  ;;  %v504_v62 = vcombine.low %v443_v59, %v477_v57  ;;  %v6117_v1 = vcombine.high %v450_v0, %v484_v63  ;;  %v508_v2 = vcombine.low %v450_v0, %v484_v63 }
  0x9e   : > { %523 = vrot.lane.b32.xlu0 %v6116_v55, %s6571_s18  ;;  %519 = vrot.lane.b32.xlu1 %v507_v56, %s6571_s18 }
  0xa2   : > { %517 = vrot.lane.b32.xlu0 %v6115_v61, %s6571_s18  ;;  %513 = vrot.lane.b32.xlu1 %v504_v62, %s6571_s18 }
  0xa6   : > { %525 = vrot.lane.b32.xlu0 %v6117_v1, %s6571_s18  ;;  %521 = vrot.lane.b32.xlu1 %v508_v2, %s6571_s18 }
 0x10c   : > { %v516_v3 = vpop.permute.xlu0 %515  ;;  %v512_v5 = vpop.permute.xlu1 %511 }
 0x10d   : > { %v538_v6 = vsel %vm535_vm0, 0.0, %v516_v3  ;;  %v536_v7 = vsel %vm535_vm0, 0.0, %v512_v5 }
 0x10e   : > { %v547_v12 = vsel %vm544_vm1, %v538_v6, 0.0  ;;  %v545_v14 = vsel %vm544_vm1, %v536_v7, 0.0 }
 0x110   : > { %v524_v8 = vpop.permute.xlu0 %523  ;;  %v520_v9 = vpop.permute.xlu1 %519 }
 0x111   : > { %v542_v10 = vsel %vm535_vm0, 0.0, %v524_v8  ;;  %v540_v11 = vsel %vm535_vm0, 0.0, %v520_v9 }
 0x112   : > { %v551_v15 = vsel %vm544_vm1, %v542_v10, 0.0  ;;  %v549_v16 = vsel %vm544_vm1, %v540_v11, 0.0 }
 0x113   : > { %v569_v17 = vcombine.low %v547_v12, %v551_v15  ;;  %v570_v18 = vcombine.high %v547_v12, %v551_v15  ;;  %v553_v19 = vcombine.low %v545_v14, %v549_v16  ;;  %v554_v20 = vcombine.high %v545_v14, %v549_v16 }
 0x114   : > { %v518_v21 = vpop.permute.xlu0 %517  ;;  %v514_v22 = vpop.permute.xlu1 %513 }
 0x115   : > { %v577_v23 = vrot.slane %v569_v17, %v6678_v13  ;;  %v584_v24 = vrot.slane %v570_v18, %v6678_v13  ;;  %v561_v25 = vrot.slane %v553_v19, %v6678_v13  ;;  %v568_v26 = vrot.slane %v554_v20, %v6678_v13 }
 0x116   : > { %v539_v28 = vsel %vm535_vm0, 0.0, %v518_v21  ;;  %v537_v29 = vsel %vm535_vm0, 0.0, %v514_v22 }
 0x117   : > { %v585_v27 = vcombine.low %v561_v25, %v577_v23  ;;  %v586_v30 = vcombine.high %v561_v25, %v577_v23  ;;  %v601_v34 = vcombine.low %v568_v26, %v584_v24  ;;  %v548_v39 = vsel %vm544_vm1, %v539_v28, 0.0 }
 0x118   : > { %v526_v31 = vpop.permute.xlu0 %525  ;;  %v522_v32 = vpop.permute.xlu1 %521  ;;  %v546_v40 = vsel %vm544_vm1, %v537_v29, 0.0  ;;  %v602_v47 = vcombine.high %v568_v26, %v584_v24 }
 0x119   : > { %v543_v35 = vsel %vm535_vm0, 0.0, %v526_v31  ;;  %v541_v36 = vsel %vm535_vm0, 0.0, %v522_v32  ;;  %v600_v37 = vrot.slane %v586_v30, %v6682_v33  ;;  %v6731_v38 = vrot.slane %v585_v27, %v6682_v33 }
 0x11a   : > { %v552_v41 = vsel %vm544_vm1, %v543_v35, 0.0  ;;  %v550_v42 = vsel %vm544_vm1, %v541_v36, 0.0  ;;  %v609_v46 = vrot.slane %v601_v34, %v6682_v33  ;;  %v616_v53 = vrot.slane %v602_v47, %v6682_v33 }
 0x11b   : > { %v637_v43 = vcombine.low %v548_v39, %v552_v41  ;;  %v621_v44 = vcombine.low %v546_v40, %v550_v42  ;;  %694 = vrot.lane.b32.xlu0 %v600_v37, %s6573_s19  ;;  %v617_v45 = vcombine.high %v6731_v38, %v6572_v58  ;;  %v638_v48 = vcombine.high %v548_v39, %v552_v41  ;;  %s6584_s19 = smov 70  }
 0x11c   : > { %v622_v50 = vcombine.high %v546_v40, %v550_v42  ;;  %v620_v59 = vcombine.high %v616_v53, %v6572_v58  ;;  %v618_v62 = vcombine.high %v600_v37, %v6572_v58  ;;  %v619_v0 = vcombine.high %v609_v46, %v6572_v58 }
 0x11d   : > { %v645_v49 = vrot.slane %v637_v43, %v6678_v13  ;;  %v629_v51 = vrot.slane %v621_v44, %v6678_v13  ;;  %690 = vrot.lane.b32.xlu1 %v617_v45, %s6574_s20  ;;  %v652_v54 = vrot.slane %v638_v48, %v6678_v13 }
 0x11e   : > { %v636_v55 = vrot.slane %v622_v50, %v6678_v13 }
 0x11f   : > { %702 = vrot.lane.b32.xlu0 %v609_v46, %s6575_s21  ;;  %v653_v52 = vcombine.low %v629_v51, %v645_v49  ;;  %v654_v57 = vcombine.high %v629_v51, %v645_v49  ;;  %s6585_s21 = smov 106   ;;  %v2349_v51 = vld [vmem:[%s7546_s2] sm:$0xff] }
 0x120   : > { %v669_v61 = vcombine.low %v636_v55, %v652_v54  ;;  %v670_v2 = vcombine.high %v636_v55, %v652_v54 }
 0x121   : > { %v661_v56 = vrot.slane %v653_v52, %v6682_v33  ;;  %v668_v60 = vrot.slane %v654_v57, %v6682_v33  ;;  %v6592_v52 = vmov 0  }
 0x122   : > { %v677_v63 = vrot.slane %v669_v61, %v6682_v33  ;;  %v684_v3 = vrot.slane %v670_v2, %v6682_v33  ;;  %6543 = vset.pattern.permute.xlu1 %v6592_v52  ;;  %6544 = vset.pattern.permute.xlu0 %v6592_v52 }
 0x123   : > { %710 = vrot.lane.b32.xlu0 %v616_v53, %s6576_s22  ;;  %718 = vrot.lane.b32.xlu1 %v661_v56, %s6568_s17  ;;  %v685_v1 = vcombine.high %v661_v56, %v6572_v58  ;;  %v686_v5 = vcombine.high %v668_v60, %v6572_v58 }
 0x124   : > { %v687_v6 = vcombine.high %v677_v63, %v6572_v58  ;;  %v688_v7 = vcombine.high %v684_v3, %v6572_v58 }
 0x127   : > { %714 = vrot.lane.b32.xlu0 %v620_v59, %s6577_s23  ;;  %726 = vrot.lane.b32.xlu1 %v668_v60, %s6578_s24  ;;  %s6586_s24 = smov 14   ;;  %v6820_v59 = vld [vmem:[%s7545_s1 + $0x8] sm:$0xff] }
 0x12b   : > { %698 = vrot.lane.b32.xlu0 %v618_v62, %s6579_s25  ;;  %734 = vrot.lane.b32.xlu1 %v677_v63, %s6580_s26  ;;  %s6587_s25 = smov 17   ;;  %s6588_s26 = smov 127  }
 0x12f   : > { %706 = vrot.lane.b32.xlu0 %v619_v0, %s6581_s29  ;;  %722 = vrot.lane.b32.xlu1 %v685_v1, %s6582_s30  ;;  %s6589_s29 = smov 110   ;;  %s6590_s30 = smov 109  }
 0x133   : > { %742 = vrot.lane.b32.xlu0 %v684_v3, %s6583_s9  ;;  %730 = vrot.lane.b32.xlu1 %v686_v5, %s6584_s19  ;;  %v6839_v3 = vld [vmem:[%s7545_s1] sm:$0xff]  ;;  %s6594_s19 = smov 111   ;;  %s6607_s9 = smov 114  }
 0x137   : > { %738 = vrot.lane.b32.xlu1 %v687_v6, %s6585_s21  ;;  %s6603_s21 = smov 58  }
 0x13b   : > { %746 = vrot.lane.b32.xlu1 %v688_v7, %s6586_s24  ;;  %s6604_s24 = smov 76  }
 0x18d   : > { %v695_v8 = vpop.permute.xlu0 %694 }
 0x18f   : > { %v691_v9 = vpop.permute.xlu1 %690 }
 0x190   : > { %v750_v16 = vsel %vm749_vm2, %v6731_v38, %v691_v9 }
 0x191   : > { %v703_v10 = vpop.permute.xlu0 %702  ;;  %v752_v19 = vsel %vm751_vm3, %v750_v16, %v695_v8  ;;  %vm777_vm3 = vcmask 113664  }
 0x195   : > { %v711_v11 = vpop.permute.xlu0 %710  ;;  %v719_v12 = vpop.permute.xlu1 %718 }
 0x199   : > { %v715_v14 = vpop.permute.xlu0 %714  ;;  %v727_v15 = vpop.permute.xlu1 %726 }
 0x19a   : > { %v764_v20 = vsel %vm7553_vm4, %v715_v14, %v719_v12 }
 0x19d   : > { %v699_v17 = vpop.permute.xlu0 %698  ;;  %v735_v18 = vpop.permute.xlu1 %734 }
 0x19e   : > { %v754_v21 = vsel %vm753_vm5, %v752_v19, %v699_v17  ;;  %vm784_vm5 = vcmask 257024  }
 0x19f   : > { %v756_v25 = vsel %vm755_vm7, %v754_v21, %v703_v10  ;;  %vm865_vm7 = vcmask 1043456  }
 0x1a1   : > { %v723_v22 = vpop.permute.xlu1 %722  ;;  %v707_v23 = vpop.permute.xlu0 %706 }
 0x1a2   : > { %v766_v24 = vsel %vm765_vm6, %v764_v20, %v723_v22  ;;  %v758_v26 = vsel %vm757_vm8, %v756_v25, %v707_v23  ;;  %vm6591_vm6 = vmmov 0   ;;  %vm861_vm8 = vcmask 31744   ;;  %v6141_v25 = vld [vmem:[%s7545_s1 + $0x20] sm:$0xff] }
 0x1a3   : > { %v768_v27 = vsel %vm767_vm9, %v766_v24, %v727_v15  ;;  %v760_v30 = vsel %vm759_vm11, %v758_v26, %v711_v11  ;;  %6302 = vmatprep.mubr.msk.f32.mxu1 %vm6591_vm6, %v6572_v58  ;;  %v6856_v11 = vld [vmem:[%s7545_s1 + $0x10] sm:$0xff]  ;;  %vm1519_vm9 = vcmask 1039360  }
 0x1a4   : > { %v762_v36 = vsel %vm761_vm14, %v760_v30, %v715_v14 }
 0x1a5   : > { %v731_v28 = vpop.permute.xlu1 %730  ;;  %v743_v34 = vpop.permute.xlu0 %742 }
 0x1a6   : > { %v770_v29 = vsel %vm769_vm10, %v768_v27, %v731_v28  ;;  %vm1856_vm10 = vcmask 900096  }
 0x1a7   : > { %v772_v31 = vsel %vm771_vm12, %v770_v29, %v735_v18  ;;  %v6135_v18 = vld [vmem:[%s7545_s1 + $0x18] sm:$0xff]  ;;  %vm2025_vm12 = vcmask 891904  }
 0x1a9   : > { %v739_v32 = vpop.permute.xlu1 %738 }
 0x1aa   : > { %v774_v35 = vsel %vm773_vm13, %v772_v31, %v739_v32  ;;  %v6147_v32 = vld [vmem:[%s7545_s1 + $0x28] sm:$0xff] }
 0x1ab   : > { %v776_v37 = vsel %vm775_vm15, %v774_v35, %v743_v34 }
 0x1ac   : > { %v6765_v38 = vcombine.low %v762_v36, %v776_v37  ;;  %v6776_v44 = vcombine.low %v776_v37, %v776_v37 }
 0x1ad   : > { %v747_v39 = vpop.permute.xlu1 %746 }
 0x1ae   : > { %783 = vst [vmem:[#allocation2 + $0x4] sm:$0xff] %v6765_v38  ;;  %v778_v40 = vsel %vm777_vm3, %v743_v34, %v747_v39 }
 0x1af   : > { %785 = vst.msk [vmem:[#allocation2 + $0xc] sm:$0xf] %vm784_vm5, %v778_v40 }
 0x1b5   : > { %v841_v41 = vld [vmem:[#allocation2] sm:$0xff] }
 0x1b6   : > { %v842_v42 = vld [vmem:[#allocation2 + $0x8] sm:$0xff]  ;;  %v848_v43 = vcombine.high %v841_v41, %v841_v41 }
 0x1b7   : > { %854 = vrot.lane.b32.xlu1 %v842_v42, %s6587_s25  ;;  %v1507_v45 = vld [vmem:[#allocation2 + $0xc] sm:$0xf]  ;;  %v1181_v50 = vcombine.high %v842_v42, %v842_v42 }
 0x1b8   : > { %852 = vrot.lane.b32.xlu0 %v848_v43, %s6587_s25  ;;  %v1676_v46 = vld [vmem:[#allocation2 + $0xc] sm:$0xf] }
 0x1b9   : > { %v1844_v47 = vld [vmem:[#allocation2 + $0xc] sm:$0xf] }
 0x1ba   : > { %v2013_v48 = vld [vmem:[#allocation2 + $0xc] sm:$0xf] }
 0x1bb   : > { %1015 = vrot.lane.b32.xlu1 %v848_v43, %s6574_s20  ;;  %v2182_v49 = vld [vmem:[#allocation2 + $0xc] sm:$0xf] }
 0x1bc   : > { %850 = vrot.lane.b32.xlu0 %v841_v41, %s6587_s25 }
 0x1bf   : > { %1013 = vrot.lane.b32.xlu1 %v841_v41, %s6574_s20 }
 0x1c0   : > { %1017 = vrot.lane.b32.xlu0 %v842_v42, %s6574_s20 }
 0x1c3   : > { %1186 = vrot.lane.b32.xlu1 %v842_v42, %s6568_s17 }
 0x1c4   : > { %1184 = vrot.lane.b32.xlu0 %v848_v43, %s6568_s17 }
 0x1c7   : > { %1515 = vrot.lane.b32.xlu1 %v6776_v44, %s6588_s26 }
 0x1c8   : > { %1182 = vrot.lane.b32.xlu0 %v841_v41, %s6568_s17  ;;  %v6153_v41 = vld [vmem:[%s7545_s1 + $0x30] sm:$0xff] }
 0x1cb   : > { %1513 = vrot.lane.b32.xlu1 %v6765_v38, %s6588_s26 }
 0x1cc   : > { %1517 = vrot.lane.b32.xlu0 %v1507_v45, %s6588_s26  ;;  %v1347_v45 = vld [vmem:[#allocation2 + $0xc] sm:$0xf] }
 0x1cf   : > { %1686 = vrot.lane.b32.xlu1 %v1676_v46, %s6577_s23  ;;  %v6159_v46 = vld [vmem:[%s7545_s1 + $0x38] sm:$0xff] }
 0x1d0   : > { %1684 = vrot.lane.b32.xlu0 %v6776_v44, %s6577_s23 }
 0x1d3   : > { %1852 = vrot.lane.b32.xlu1 %v6776_v44, %s6589_s29 }
 0x1d4   : > { %1682 = vrot.lane.b32.xlu0 %v6765_v38, %s6577_s23  ;;  %s6606_s23 = smov 22  }
 0x1d7   : > { %1850 = vrot.lane.b32.xlu1 %v6765_v38, %s6589_s29 }
 0x1d8   : > { %1854 = vrot.lane.b32.xlu0 %v1844_v47, %s6589_s29 }
 0x1db   : > { %2023 = vrot.lane.b32.xlu1 %v2013_v48, %s6590_s30  ;;  %v6165_v48 = vld [vmem:[%s7545_s1 + $0x40] sm:$0xff] }
 0x1dc   : > { %2021 = vrot.lane.b32.xlu0 %v6776_v44, %s6590_s30 }
 0x1df   : > { %2190 = vrot.lane.b32.xlu1 %v6776_v44, %s6576_s22 }
 0x1e0   : > { %2019 = vrot.lane.b32.xlu0 %v6765_v38, %s6590_s30 }
 0x1e3   : > { %2188 = vrot.lane.b32.xlu1 %v6765_v38, %s6576_s22 }
 0x1e4   : > { %2192 = vrot.lane.b32.xlu0 %v2182_v49, %s6576_s22  ;;  %v787_v49 = vand.u32 127, %v355_v4  ;;  %s6593_s22 = smov 19  }
 0x1e7   : > { %1019 = vrot.lane.b32.xlu1 %v1181_v50, %s6574_s20 }
 0x1e8   : > { %856 = vrot.lane.b32.xlu0 %v1181_v50, %s6587_s25 }
 0x1eb   : > { %2352 = vperm.xlu1 %6543, %v2349_v51   ;;  %v6982_v51 = vmul.u32.u64.low 3817748708, %v787_v49  ;;  %v6983_v52 = vmul.u32.u64.high 3817748708, %v787_v49, %v6982_v51 }
 0x1ec   : > { %1188 = vrot.lane.b32.xlu0 %v1181_v50, %s6568_s17  ;;  %v788_v50 = vadd.s32 128, %v787_v49 }
 0x229   : > { %v6812_v53 = vpop.permute.xlu1 %854 }
 0x22a   : > { %v853_v54 = vpop.permute.xlu0 %852 }
 0x22b   : > { %v859_v55 = vsel %vm544_vm1, %v853_v54, %v6812_v53 }
 0x22c   : > { %6119 = vmatprep.subr.msk.mxu0 %vm865_vm7, %v859_v55 }
 0x22d   : > { %v1016_v56 = vpop.permute.xlu1 %1015 }
 0x22e   : > { %v851_v57 = vpop.permute.xlu0 %850 }
 0x22f   : > { %v858_v60 = vsel %vm544_vm1, %v851_v57, %v853_v54  ;;  %v796_v57 = vshrl.u32 %v6983_v52, 4  ;;  %v5279_v52 = vld [vmem:[%s7550_s6] sm:$0xff] }
 0x230   : > { %6120 = vmatpush1.msk.msra.mxu0 %vm865_vm7, %v858_v60  ;;  %v789_v60 = vadd.s32 256, %v787_v49 }
 0x231   : > { %6121 = vmatmul.mubr.msk.f32.vlgmr.msra.gmra.mrb[0].mxu0 %vm861_vm8, %v6820_v59  ;;  %v1014_v61 = vpop.permute.xlu1 %1013 }
 0x232   : > { %v6826_v62 = vpop.permute.xlu0 %1017  ;;  %1097 = vmatprep.mubr.f32.mxu0 %v6572_v58  ;;  %v1021_v0 = vsel %vm749_vm2, %v1014_v61, %v1016_v56 }
 0x233   : > { %v1022_v63 = vsel %vm749_vm2, %v1016_v56, %v6826_v62 }
 0x234   : > { %6124 = vmatprep.subr.msk.mxu0 %vm865_vm7, %v1022_v63 }
 0x235   : > { %6125 = vmatpush1.msk.msra.mxu0 %vm865_vm7, %v1021_v0  ;;  %v6834_v1 = vpop.permute.xlu1 %1186  ;;  %v797_v0 = vmul.u32 18, %v796_v57 }
 0x236   : > { %v1185_v2 = vpop.permute.xlu0 %1184 }
 0x237   : > { %v1191_v5 = vsel %vm7553_vm4, %v1185_v2, %v6834_v1 }
 0x238   : > { %6130 = vmatprep.subr.msk.mxu0 %vm865_vm7, %v1191_v5  ;;  %v798_v5 = vsub.s32 %v787_v49, %v797_v0 }
 0x239   : > { %6126 = vmatmul.mubr.msk.f32.vlgmr.msra.gmra.mrb[0].mxu0 %vm861_vm8, %v6839_v3  ;;  %v1516_v6 = vpop.permute.xlu1 %1515 }
 0x23a   : > { %v1183_v7 = vpop.permute.xlu0 %1182  ;;  %1266 = vmatprep.mubr.f32.mxu0 %v6572_v58  ;;  %vm826_vm13 = vcmp.lt.s32.totalorder %v798_v5, 0 }
 0x23b   : > { %v1190_v8 = vsel %vm7553_vm4, %v1183_v7, %v1185_v2  ;;  %v6990_v4 = vmul.u32.u64.low 3817748708, %v789_v60  ;;  %v6991_v2 = vmul.u32.u64.high 3817748708, %v789_v60, %v6990_v4 }
 0x23c   : > { %6131 = vmatpush1.msk.msra.mxu0 %vm865_vm7, %v1190_v8 }
 0x23d   : > { %6136 = vmatprep.subr.msk.mxu0 %vm865_vm7, %v6776_v44  ;;  %v1514_v9 = vpop.permute.xlu1 %1513 }
 0x23e   : > { %v6851_v10 = vpop.permute.xlu0 %1517  ;;  %v1520_v19 = vsel %vm1519_vm9, %v1514_v9, %v1516_v6 }
 0x23f   : > { %v1521_v15 = vsel %vm1519_vm9, %v1516_v6, %v6851_v10 }
 0x241   : > { %6132 = vmatmul.mubr.msk.f32.vlgmr.msra.gmra.mrb[0].mxu0 %vm861_vm8, %v6856_v11  ;;  %v6860_v12 = vpop.permute.xlu1 %1686 }
 0x242   : > { %6137 = vmatpush1.msk.msra.mxu0 %vm865_vm7, %v6765_v38  ;;  %v1685_v14 = vpop.permute.xlu0 %1684  ;;  %1426 = vmatprep.mubr.f32.mxu0 %v6572_v58 }
 0x243   : > { %6142 = vmatprep.subr.msk.mxu0 %vm865_vm7, %v1521_v15  ;;  %v1689_v22 = vsel %vm761_vm14, %v1685_v14, %v6860_v12 }
 0x245   : > { %v1853_v16 = vpop.permute.xlu1 %1852 }
 0x246   : > { %v1683_v17 = vpop.permute.xlu0 %1682 }
 0x247   : > { %v1688_v26 = vsel %vm761_vm14, %v1683_v17, %v1685_v14  ;;  %v818_v14 = vshrl.u32 %v6991_v2, 4 }
 0x249   : > { %6138 = vmatmul.mubr.msk.f32.vlgmr.msra.gmra.mrb[0].mxu0 %vm861_vm8, %v6135_v18  ;;  %v1851_v20 = vpop.permute.xlu1 %1850 }
 0x24a   : > { %6143 = vmatpush1.msk.msra.mxu0 %vm865_vm7, %v1520_v19  ;;  %v6874_v21 = vpop.permute.xlu0 %1854  ;;  %1595 = vmatprep.mubr.f32.mxu0 %v6572_v58  ;;  %v1857_v34 = vsel %vm1856_vm10, %v1851_v20, %v1853_v16 }
 0x24b   : > { %6148 = vmatprep.subr.msk.mxu0 %vm865_vm7, %v1689_v22  ;;  %v1858_v29 = vsel %vm1856_vm10, %v1853_v16, %v6874_v21 }
 0x24d   : > { %v6880_v23 = vpop.permute.xlu1 %2023 }
 0x24e   : > { %v2022_v24 = vpop.permute.xlu0 %2021 }
 0x24f   : > { %v2027_v35 = vsel %vm2025_vm12, %v2022_v24, %v6880_v23 }
 0x251   : > { %6144 = vmatmul.mubr.msk.f32.vlgmr.msra.gmra.mrb[0].mxu0 %vm861_vm8, %v6141_v25  ;;  %v2191_v27 = vpop.permute.xlu1 %2190 }
 0x252   : > { %6149 = vmatpush1.msk.msra.mxu0 %vm865_vm7, %v1688_v26  ;;  %v2020_v28 = vpop.permute.xlu0 %2019  ;;  %1763 = vmatprep.mubr.f32.mxu0 %v6572_v58 }
 0x253   : > { %6154 = vmatprep.subr.msk.mxu0 %vm865_vm7, %v1858_v29  ;;  %v2026_v43 = vsel %vm2025_vm12, %v2020_v28, %v2022_v24 }
 0x255   : > { %v2189_v30 = vpop.permute.xlu1 %2188 }
 0x256   : > { %v2193_v31 = vpop.permute.xlu0 %2192  ;;  %v2194_v47 = vsel %vm759_vm11, %v2189_v30, %v2191_v27 }
 0x257   : > { %v2195_v44 = vsel %vm759_vm11, %v2191_v27, %v2193_v31  ;;  %vm823_vm11 = vcmp.ne.s32.totalorder %v798_v5, 0 }
 0x258   : > { %vm6994_vm3 = vmand %vm826_vm13, %vm823_vm11 }
 0x259   : > { %6150 = vmatmul.mubr.msk.f32.vlgmr.msra.gmra.mrb[0].mxu0 %vm861_vm8, %v6147_v32  ;;  %v1020_v36 = vpop.permute.xlu1 %1019 }
 0x25a   : > { %6155 = vmatpush1.msk.msra.mxu0 %vm865_vm7, %v1857_v34  ;;  %v857_v37 = vpop.permute.xlu0 %856  ;;  %1932 = vmatprep.mubr.f32.mxu0 %v6572_v58  ;;  %v1023_v39 = vsel %vm749_vm2, %v6826_v62, %v1020_v36 }
 0x25b   : > { %6160 = vmatprep.subr.msk.mxu0 %vm865_vm7, %v2027_v35  ;;  %v860_v38 = vsel %vm544_vm1, %v6812_v53, %v857_v37  ;;  %v6985_v53 = vmul.u32.u64.low 3817748708, %v788_v50  ;;  %v6986_v54 = vmul.u32.u64.high 3817748708, %v788_v50, %v6985_v53 }
 0x25c   : > { %6301 = vmatpush3.msk.msra.mxu1 %vm865_vm7, %v860_v38 }
 0x25d   : > { %6303 = vmatmul.mubr.msk.f32.vlgmr.msra.gmra.mrb[0].mxu1 %vm861_vm8, %v6820_v59  ;;  %6305 = vmatprep.subr.mxu1 %v6572_v58  ;;  %v807_v59 = vshrl.u32 %v6986_v54, 4 }
 0x25e   : > { %6306 = vmatpush3.msk.msra.mxu1 %vm865_vm7, %v1023_v39  ;;  %v1189_v40 = vpop.permute.xlu0 %1188  ;;  %6307 = vmatprep.mubr.msk.f32.mxu1 %vm6591_vm6, %v6572_v58 }
 0x25f   : > { %v1192_v42 = vsel %vm7553_vm4, %v6834_v1, %v1189_v40  ;;  %6310 = vmatprep.subr.mxu1 %v6572_v58  ;;  %v808_v1 = vmul.u32 18, %v807_v59  ;;  %vm3346_vm4 = vcmask 908288  }
 0x261   : > { %6308 = vmatmul.mubr.msk.f32.vlgmr.msra.gmra.mrb[2].mxu1 %vm861_vm8, %v6839_v3  ;;  %6156 = vmatmul.mubr.msk.f32.vlgmr.msra.gmra.mrb[0].mxu0 %vm861_vm8, %v6153_v41  ;;  %v809_v8 = vsub.s32 %v788_v50, %v808_v1 }
 0x262   : > { %6311 = vmatpush3.msk.msra.mxu1 %vm865_vm7, %v1192_v42  ;;  %6161 = vmatpush1.msk.msra.mxu0 %vm865_vm7, %v2026_v43 }
 0x263   : > { %6166 = vmatprep.subr.msk.mxu0 %vm865_vm7, %v2195_v44  ;;  %6312 = vmatprep.mubr.msk.f32.mxu1 %vm6591_vm6, %v6572_v58  ;;  %vm824_vm14 = vcmp.ne.s32.totalorder %v809_v8, 0  ;;  %vm827_vm15 = vcmp.lt.s32.totalorder %v809_v8, 0  ;;  %v833_v16 = vadd.s32 18, %v809_v8 }
 0x264   : > { %6315 = vmatprep.subr.mxu1 %v6572_v58  ;;  %2101 = vmatprep.mubr.f32.mxu0 %v6572_v58  ;;  %vm6998_vm5 = vmand %vm827_vm15, %vm824_vm14 }
 0x265   : > { %6313 = vmatmul.mubr.msk.f32.vlgmr.msra.gmra.mrb[4].mxu1 %vm861_vm8, %v6856_v11 }
 0x266   : > { %6316 = vmatpush3.msk.msra.mxu1 %vm865_vm7, %v1347_v45  ;;  %6317 = vmatprep.mubr.msk.f32.mxu1 %vm6591_vm6, %v6572_v58 }
 0x267   : > { %6320 = vmatprep.subr.mxu1 %v6572_v58 }
 0x269   : > { %6318 = vmatmul.mubr.msk.f32.vlgmr.msra.gmra.mrb[6].mxu1 %vm861_vm8, %v6135_v18  ;;  %6162 = vmatmul.mubr.msk.f32.vlgmr.msra.gmra.mrb[0].mxu0 %vm861_vm8, %v6159_v46 }
 0x26a   : > { %6321 = vmatpush3.msk.msra.mxu1 %vm865_vm7, %v6851_v10  ;;  %6167 = vmatpush1.msk.msra.mxu0 %vm865_vm7, %v2194_v47 }
 0x26b   : > { %6322 = vmatprep.mubr.msk.f32.mxu1 %vm6591_vm6, %v6572_v58  ;;  %6325 = vmatprep.subr.mxu1 %v6572_v58 }
 0x26c   : > { %2269 = vmatprep.mubr.f32.mxu0 %v6572_v58 }
 0x26d   : > { %6323 = vmatmul.mubr.msk.f32.vlgmr.msra.gmra.mrb[8].mxu1 %vm861_vm8, %v6141_v25  ;;  %v836_v25 = vsel %vm6998_vm5, %v833_v16, %v809_v8 }
 0x26e   : > { %6326 = vmatpush3.msk.msra.mxu1 %vm865_vm7, %v6860_v12  ;;  %6327 = vmatprep.mubr.msk.f32.mxu1 %vm6591_vm6, %v6572_v58  ;;  %v832_v12 = vadd.s32 18, %v798_v5  ;;  %vm7015_vm13 = vcmp.lt.s32.totalorder %v836_v25, 16 }
 0x26f   : > { %6330 = vmatprep.subr.mxu1 %v6572_v58 }
 0x270   : > { %v835_v22 = vsel %vm6994_vm3, %v832_v12, %v798_v5 }
 0x271   : > { %6328 = vmatmul.mubr.msk.f32.vlgmr.msra.gmra.mrb[10].mxu1 %vm861_vm8, %v6147_v32  ;;  %6168 = vmatmul.mubr.msk.f32.vlgmr.msra.gmra.mrb[0].mxu0 %vm861_vm8, %v6165_v48  ;;  %vm7008_vm11 = vcmp.lt.s32.totalorder %v835_v22, 16 }
 0x272   : > { %6331 = vmatpush3.msk.msra.mxu1 %vm865_vm7, %v6874_v21  ;;  %6332 = vmatprep.mubr.msk.f32.mxu1 %vm6591_vm6, %v6572_v58  ;;  %v2353_v21 = vpop.permute.xlu1 %2352 }
 0x273   : > { %6335 = vmatprep.subr.mxu1 %v6572_v58  ;;  %2467 = vmatprep.mubr.f32.mxu0 %v6572_v58 }
 0x275   : > { %6333 = vmatmul.mubr.msk.f32.vlgmr.msra.gmra.mrb[12].mxu1 %vm861_vm8, %v6153_v41 }
 0x276   : > { %6336 = vmatpush3.msk.msra.mxu1 %vm865_vm7, %v6880_v23  ;;  %6337 = vmatprep.mubr.msk.f32.mxu1 %vm6591_vm6, %v6572_v58  ;;  %v819_v23 = vmul.u32 18, %v818_v14  ;;  %v7118_v14 = vld [vmem:[%s7547_s3 + $0x10] sm:$0xff] }
 0x277   : > { %6340 = vmatprep.subr.mxu1 %v6572_v58 }
 0x278   : > { %v820_v36 = vsub.s32 %v789_v60, %v819_v23 }
 0x279   : > { %6338 = vmatmul.mubr.msk.f32.vlgmr.msra.gmra.mrb[14].mxu1 %vm861_vm8, %v6159_v46 }
 0x27a   : > { %6341 = vmatpush3.msk.msra.mxu1 %vm865_vm7, %v2193_v31  ;;  %6342 = vmatprep.mubr.msk.f32.mxu1 %vm6591_vm6, %v6572_v58  ;;  %vm825_vm14 = vcmp.ne.s32.totalorder %v820_v36, 0  ;;  %vm828_vm15 = vcmp.lt.s32.totalorder %v820_v36, 0  ;;  %v834_v46 = vadd.s32 18, %v820_v36 }
 0x27b   : > { %6345 = vmatprep.subr.mxu1 %v6572_v58  ;;  %vm831_vm3 = vmand %vm828_vm15, %vm825_vm14  ;;  %vm2372_vm14 = vcmask 261120   ;;  %vm2399_vm15 = vcmask 64512  }
 0x27d   : > { %6343 = vmatmul.mubr.msk.f32.vlgmr.msra.gmra.mrb[16].mxu1 %vm861_vm8, %v6165_v48  ;;  %v837_v48 = vsel %vm831_vm3, %v834_v46, %v820_v36  ;;  %vm2552_vm3 = vcmask 154624   ;;  %v6188_v46 = vld [vmem:[%s7547_s3 + $0x30] sm:$0xff] }
 0x27e   : > { %6347 = vmatprep.mubr.msk.f32.mxu1 %vm6591_vm6, %v6572_v58  ;;  %vm7036_vm5 = vcmp.lt.s32.totalorder %v837_v48, 16 }
 0x330   : > { %v1009_v55 = vpop.f32.mrb[0].mxu1 }
 0x331   : > { %v6304_v56 = vpop.f32.mrb[1].mxu1 }
 0x332   : > { %v3819_v56 = vld [vmem:[%s7548_s4] sm:$0xff] }
 0x334   : > { %v1170_v61 = vpop.f32.mrb[2].mxu1 }
 0x335   : > { %v1171_v62 = vadd.f32 %v1170_v61, %v1009_v55  ;;  %v6309_v63 = vpop.f32.mrb[3].mxu1 }
 0x338   : > { %v1339_v3 = vpop.f32.mrb[4].mxu1 }
 0x339   : > { %v1345_v6 = vadd.f32 %v1339_v3, %v1171_v62  ;;  %v6314_v7 = vpop.f32.mrb[5].mxu1  ;;  %v7089_v62 = vld [vmem:[%s7547_s3 + $0x8] sm:$0xff] }
 0x33c   : > { %v1499_v9 = vpop.f32.mrb[6].mxu1 }
 0x33d   : > { %v1505_v10 = vadd.f32 %v1499_v9, %v1345_v6  ;;  %v6319_v11 = vpop.f32.mrb[7].mxu1  ;;  %v7103_v6 = vld [vmem:[%s7547_s3] sm:$0xff] }
 0x340   : > { %v1668_v17 = vpop.f32.mrb[8].mxu1 }
 0x341   : > { %v1674_v19 = vadd.f32 %v1668_v17, %v1505_v10  ;;  %v6324_v20 = vpop.f32.mrb[9].mxu1 }
 0x344   : > { %v2271_v24 = vpop.f32.mrb[0].mxu0  ;;  %v1836_v26 = vpop.f32.mrb[10].mxu1 }
 0x345   : > { %v7006_v27 = vadd.f32 %v2353_v21, %v2271_v24  ;;  %v2273_v28 = vpop.f32.mrb[1].mxu0  ;;  %v1842_v29 = vadd.f32 %v1836_v26, %v1674_v19  ;;  %v6329_v30 = vpop.f32.mrb[11].mxu1 }
 0x346   : > { %v7012_v32 = vadd.f32 %v2353_v21, %v2273_v28  ;;  %v6182_v28 = vld [vmem:[%s7547_s3 + $0x20] sm:$0xff] }
 0x347   : > { %v2358_v34 = vmax.f32 %v7006_v27, 0.0 }
 0x348   : > { %v2359_v37 = vmax.f32 %v7012_v32, 0.0  ;;  %v2005_v38 = vpop.f32.mrb[12].mxu1 }
 0x349   : > { %v2367_v39 = vsel %vm7008_vm11, %v2358_v34, 0.0  ;;  %v2011_v40 = vadd.f32 %v2005_v38, %v1842_v29  ;;  %v6334_v41 = vpop.f32.mrb[13].mxu1 }
 0x34a   : > { %v2368_v42 = vsel %vm7015_vm13, %v2359_v37, 0.0  ;;  %2387 = vrot.lane.b32.xlu0 %v2367_v39, %s6574_s20 }
 0x34b   : > { %2389 = vrot.lane.b32.xlu1 %v2368_v42, %s6574_s20 }
 0x34c   : > { %v2174_v43 = vpop.f32.mrb[14].mxu1 }
 0x34d   : > { %v2180_v44 = vadd.f32 %v2174_v43, %v2011_v40  ;;  %v6339_v45 = vpop.f32.mrb[15].mxu1 }
 0x34e   : > { %2385 = vrot.lane.b32.xlu0 %v6572_v58, %s6574_s20 }
 0x34f   : > { %2546 = vrot.lane.b32.xlu1 %v2367_v39, %s6593_s22 }
 0x350   : > { %v2342_v47 = vpop.f32.mrb[16].mxu1 }
 0x351   : > { %v2348_v49 = vadd.f32 %v2342_v47, %v2180_v44  ;;  %v6344_v50 = vpop.f32.mrb[17].mxu1 }
 0x352   : > { %2548 = vrot.lane.b32.xlu0 %v2368_v42, %s6593_s22 }
 0x353   : > { %v2357_v51 = vadd.f32 %v2353_v21, %v2348_v49  ;;  %2544 = vrot.lane.b32.xlu1 %v6572_v58, %s6593_s22  ;;  %v7135_v21 = vld [vmem:[%s7547_s3 + $0x18] sm:$0xff] }
 0x355   : > { %v2360_v53 = vmax.f32 %v2357_v51, 0.0 }
 0x356   : > { %2707 = vrot.lane.b32.xlu0 %v2367_v39, %s6587_s25 }
 0x357   : > { %v2369_v54 = vsel %vm7036_vm5, %v2360_v53, 0.0  ;;  %2709 = vrot.lane.b32.xlu1 %v2368_v42, %s6587_s25  ;;  %v6191_v53 = vld [vmem:[%s7547_s3 + $0x38] sm:$0xff] }
 0x358   : > { %2373 = vst.msk [vmem:[#allocation3 + $0x18] sm:$0xff] %vm2372_vm14, %v2369_v54 }
 0x35a   : > { %2705 = vrot.lane.b32.xlu0 %v6572_v58, %s6587_s25 }
 0x35b   : > { %2870 = vrot.lane.b32.xlu1 %v2367_v39, %s6571_s18 }
 0x35e   : > { %2872 = vrot.lane.b32.xlu0 %v2368_v42, %s6571_s18 }
 0x35f   : > { %2868 = vrot.lane.b32.xlu1 %v6572_v58, %s6571_s18  ;;  %v7052_v55 = vld [vmem:[#allocation3 + $0x18] sm:$0xff] }
 0x362   : > { %3182 = vrot.lane.b32.xlu0 %v2368_v42, %s6588_s26 }
 0x363   : > { %3184 = vrot.lane.b32.xlu1 %v7052_v55, %s6588_s26 }
 0x366   : > { %3180 = vrot.lane.b32.xlu0 %v2367_v39, %s6588_s26 }
 0x367   : > { %3342 = vrot.lane.b32.xlu1 %v2368_v42, %s6594_s19 }
 0x36a   : > { %3344 = vrot.lane.b32.xlu0 %v7052_v55, %s6594_s19 }
 0x36b   : > { %3340 = vrot.lane.b32.xlu1 %v2367_v39, %s6594_s19 }
 0x36e   : > { %3503 = vrot.lane.b32.xlu0 %v2368_v42, %s6589_s29 }
 0x36f   : > { %3505 = vrot.lane.b32.xlu1 %v7052_v55, %s6589_s29 }
 0x372   : > { %3501 = vrot.lane.b32.xlu0 %v2367_v39, %s6589_s29 }
 0x373   : > { %3663 = vrot.lane.b32.xlu1 %v2368_v42, %s6590_s30 }
 0x376   : > { %3665 = vrot.lane.b32.xlu0 %v7052_v55, %s6590_s30 }
 0x377   : > { %3661 = vrot.lane.b32.xlu1 %v2367_v39, %s6590_s30 }
 0x37a   : > { %2391 = vrot.lane.b32.xlu0 %v7052_v55, %s6574_s20 }
 0x37b   : > { %2550 = vrot.lane.b32.xlu1 %v7052_v55, %s6593_s22 }
 0x37e   : > { %2711 = vrot.lane.b32.xlu0 %v7052_v55, %s6587_s25 }
 0x37f   : > { %2874 = vrot.lane.b32.xlu1 %v7052_v55, %s6571_s18 }
 0x382   : > { %3822 = vperm.xlu0 %6544, %v3819_v56   ;;  %v6194_v56 = vld [vmem:[%s7547_s3 + $0x40] sm:$0xff] }
 0x386   : > { %3848 = vrot.lane.b32.xlu0 %v6572_v58, %s6574_s20 }
 0x3bc   : > { %v2388_v57 = vpop.permute.xlu0 %2387 }
 0x3bd   : > { %v7082_v59 = vpop.permute.xlu1 %2389 }
 0x3be   : > { %v2394_v60 = vsel %vm749_vm2, %v2388_v57, %v7082_v59 }
 0x3bf   : > { %2403 = vmatprep.subr.mxu0 %v2394_v60 }
 0x3c0   : > { %v2386_v61 = vpop.permute.xlu0 %2385 }
 0x3c1   : > { %v2393_v63 = vsel %vm749_vm2, %v2386_v61, %v2388_v57  ;;  %v2547_v0 = vpop.permute.xlu1 %2546 }
 0x3c2   : > { %2404 = vmatpush1.msra.mxu0 %v2393_v63 }
 0x3c3   : > { %6172 = vmatmul.mubr.msk.f32.vlgmr.msra.gmra.mrb[2].mxu0 %vm2399_vm15, %v7089_v62 }
 0x3c4   : > { %v7094_v1 = vpop.permute.xlu0 %2548  ;;  %2626 = vmatprep.mubr.f32.mxu0 %v6572_v58 }
 0x3c5   : > { %v2545_v4 = vpop.permute.xlu1 %2544  ;;  %v2554_v2 = vsel %vm2552_vm3, %v2547_v0, %v7094_v1 }
 0x3c6   : > { %v2553_v3 = vsel %vm2552_vm3, %v2545_v4, %v2547_v0  ;;  %2562 = vmatprep.subr.mxu0 %v2554_v2 }
 0x3c7   : > { %2563 = vmatpush1.msra.mxu0 %v2553_v3 }
 0x3c8   : > { %v2708_v5 = vpop.permute.xlu0 %2707 }
 0x3c9   : > { %v7105_v7 = vpop.permute.xlu1 %2709 }
 0x3ca   : > { %v2714_v8 = vsel %vm544_vm1, %v2708_v5, %v7105_v7 }
 0x3cb   : > { %6174 = vmatmul.mubr.msk.f32.vlgmr.msra.gmra.mrb[2].mxu0 %vm2399_vm15, %v7103_v6  ;;  %2722 = vmatprep.subr.mxu0 %v2714_v8 }
 0x3cc   : > { %v2706_v9 = vpop.permute.xlu0 %2705  ;;  %2786 = vmatprep.mubr.f32.mxu0 %v6572_v58 }
 0x3cd   : > { %v2713_v10 = vsel %vm544_vm1, %v2706_v9, %v2708_v5  ;;  %v2871_v11 = vpop.permute.xlu1 %2870 }
 0x3ce   : > { %2723 = vmatpush1.msra.mxu0 %v2713_v10 }
 0x3d0   : > { %v7113_v12 = vpop.permute.xlu0 %2872 }
 0x3d1   : > { %v2869_v15 = vpop.permute.xlu1 %2868  ;;  %v2877_v16 = vsel %vm535_vm0, %v2871_v11, %v7113_v12 }
 0x3d2   : > { %v2876_v17 = vsel %vm535_vm0, %v2869_v15, %v2871_v11  ;;  %2885 = vmatprep.subr.mxu0 %v2877_v16 }
 0x3d3   : > { %6177 = vmatmul.mubr.msk.f32.vlgmr.msra.gmra.mrb[2].mxu0 %vm2399_vm15, %v7118_v14 }
 0x3d4   : > { %2886 = vmatpush1.msra.mxu0 %v2876_v17  ;;  %v3183_v18 = vpop.permute.xlu0 %3182  ;;  %2949 = vmatprep.mubr.f32.mxu0 %v6572_v58 }
 0x3d5   : > { %6550 = vmatprep.subr.msk.mxu0 %vm7015_vm13, %v2359_v37  ;;  %v7130_v19 = vpop.permute.xlu1 %3184  ;;  %v6185_v37 = vld [vmem:[%s7547_s3 + $0x28] sm:$0xff] }
 0x3d6   : > { %v3187_v23 = vsel %vm1519_vm9, %v3183_v18, %v7130_v19 }
 0x3d8   : > { %v3181_v20 = vpop.permute.xlu0 %3180 }
 0x3d9   : > { %v3343_v22 = vpop.permute.xlu1 %3342  ;;  %v3186_v27 = vsel %vm1519_vm9, %v3181_v20, %v3183_v18 }
 0x3db   : > { %6180 = vmatmul.mubr.msk.f32.vlgmr.msra.gmra.mrb[2].mxu0 %vm2399_vm15, %v7135_v21 }
 0x3dc   : > { %6551 = vmatpush1.msk.msra.mxu0 %vm7008_vm11, %v2358_v34  ;;  %v7145_v24 = vpop.permute.xlu0 %3344  ;;  %3098 = vmatprep.mubr.f32.mxu0 %v6572_v58  ;;  %v7157_v58 = vld [vmem:[#allocation3] sm:$0xff] }
 0x3dd   : > { %3194 = vmatprep.subr.mxu0 %v3187_v23  ;;  %v3341_v25 = vpop.permute.xlu1 %3340  ;;  %v3348_v30 = vsel %vm3346_vm4, %v3343_v22, %v7145_v24 }
 0x3de   : > { %v3347_v39 = vsel %vm3346_vm4, %v3341_v25, %v3343_v22 }
 0x3e0   : > { %v3504_v26 = vpop.permute.xlu0 %3503 }
 0x3e1   : > { %v7151_v29 = vpop.permute.xlu1 %3505 }
 0x3e2   : > { %v3508_v40 = vsel %vm1856_vm10, %v3504_v26, %v7151_v29 }
 0x3e3   : > { %6183 = vmatmul.mubr.msk.f32.vlgmr.msra.gmra.mrb[2].mxu0 %vm2399_vm15, %v6182_v28 }
 0x3e4   : > { %3195 = vmatpush1.msra.mxu0 %v3186_v27  ;;  %v3502_v32 = vpop.permute.xlu0 %3501  ;;  %3258 = vmatprep.mubr.f32.mxu0 %v7157_v58 }
 0x3e5   : > { %3355 = vmatprep.subr.mxu0 %v3348_v30  ;;  %v3664_v34 = vpop.permute.xlu1 %3663  ;;  %v3507_v48 = vsel %vm1856_vm10, %v3502_v32, %v3504_v26 }
 0x3e8   : > { %v7160_v36 = vpop.permute.xlu0 %3665 }
 0x3e9   : > { %v3662_v38 = vpop.permute.xlu1 %3661  ;;  %v3668_v50 = vsel %vm2025_vm12, %v3664_v34, %v7160_v36 }
 0x3ea   : > { %v3667_v54 = vsel %vm2025_vm12, %v3662_v38, %v3664_v34 }
 0x3eb   : > { %6186 = vmatmul.mubr.msk.f32.vlgmr.msra.gmra.mrb[2].mxu0 %vm2399_vm15, %v6185_v37 }
 0x3ec   : > { %3356 = vmatpush1.msra.mxu0 %v3347_v39  ;;  %v2392_v41 = vpop.permute.xlu0 %2391  ;;  %3419 = vmatprep.mubr.f32.mxu0 %v7157_v58 }
 0x3ed   : > { %3515 = vmatprep.subr.mxu0 %v3508_v40  ;;  %v2395_v42 = vsel %vm749_vm2, %v7082_v59, %v2392_v41  ;;  %v2551_v43 = vpop.permute.xlu1 %2550  ;;  %v6197_v41 = vld [vmem:[%s7549_s5 + $0x8] sm:$0xff] }
 0x3ee   : > { %v2555_v44 = vsel %vm2552_vm3, %v7094_v1, %v2551_v43  ;;  %6346 = vmatpush3.msra.mxu1 %v2395_v42 }
 0x3ef   : > { %6348 = vmatmul.mubr.msk.f32.vlgmr.msra.gmra.mrb[18].mxu1 %vm2399_vm15, %v7089_v62  ;;  %6350 = vmatprep.subr.mxu1 %v7157_v58 }
 0x3f0   : > { %6351 = vmatpush3.msra.mxu1 %v2555_v44  ;;  %v2712_v45 = vpop.permute.xlu0 %2711  ;;  %6352 = vmatprep.mubr.msk.f32.mxu1 %vm6591_vm6, %v7157_v58 }
 0x3f1   : > { %v2715_v47 = vsel %vm544_vm1, %v7105_v7, %v2712_v45  ;;  %6355 = vmatprep.subr.mxu1 %v7157_v58  ;;  %v2875_v49 = vpop.permute.xlu1 %2874 }
 0x3f2   : > { %v2878_v51 = vsel %vm535_vm0, %v7113_v12, %v2875_v49  ;;  %v3841_v49 = vld [vmem:[%s7549_s5] sm:$0xff] }
 0x3f3   : > { %6353 = vmatmul.mubr.msk.f32.vlgmr.msra.gmra.mrb[20].mxu1 %vm2399_vm15, %v7103_v6  ;;  %6189 = vmatmul.mubr.msk.f32.vlgmr.msra.gmra.mrb[2].mxu0 %vm2399_vm15, %v6188_v46 }
 0x3f4   : > { %6356 = vmatpush3.msra.mxu1 %v2715_v47  ;;  %3516 = vmatpush1.msra.mxu0 %v3507_v48 }
 0x3f5   : > { %3675 = vmatprep.subr.mxu0 %v3668_v50  ;;  %6357 = vmatprep.mubr.msk.f32.mxu1 %vm6591_vm6, %v7157_v58 }
 0x3f6   : > { %6360 = vmatprep.subr.mxu1 %v7157_v58  ;;  %3579 = vmatprep.mubr.f32.mxu0 %v7157_v58 }
 0x3f7   : > { %6358 = vmatmul.mubr.msk.f32.vlgmr.msra.gmra.mrb[22].mxu1 %vm2399_vm15, %v7118_v14 }
 0x3f8   : > { %6361 = vmatpush3.msra.mxu1 %v2878_v51  ;;  %6362 = vmatprep.mubr.msk.f32.mxu1 %vm6591_vm6, %v7157_v58 }
 0x3f9   : > { %6365 = vmatprep.subr.mxu1 %v7157_v58 }
 0x3fb   : > { %6363 = vmatmul.mubr.msk.f32.vlgmr.msra.gmra.mrb[24].mxu1 %vm2399_vm15, %v7135_v21  ;;  %6192 = vmatmul.mubr.msk.f32.vlgmr.msra.gmra.mrb[2].mxu0 %vm2399_vm15, %v6191_v53 }
 0x3fc   : > { %6366 = vmatpush3.msra.mxu1 %v7052_v55  ;;  %3676 = vmatpush1.msra.mxu0 %v3667_v54 }
 0x3fd   : > { %6367 = vmatprep.mubr.msk.f32.mxu1 %vm6591_vm6, %v7157_v58  ;;  %6370 = vmatprep.subr.mxu1 %v7157_v58 }
 0x3fe   : > { %3739 = vmatprep.mubr.f32.mxu0 %v7157_v58 }
 0x3ff   : > { %6368 = vmatmul.mubr.msk.f32.vlgmr.msra.gmra.mrb[26].mxu1 %vm2399_vm15, %v6182_v28 }
 0x400   : > { %6371 = vmatpush3.msra.mxu1 %v7130_v19  ;;  %6372 = vmatprep.mubr.msk.f32.mxu1 %vm6591_vm6, %v7157_v58 }
 0x401   : > { %6375 = vmatprep.subr.mxu1 %v7157_v58  ;;  %v3823_v7 = vpop.permute.xlu0 %3822 }
 0x403   : > { %6373 = vmatmul.mubr.msk.f32.vlgmr.msra.gmra.mrb[28].mxu1 %vm2399_vm15, %v6185_v37  ;;  %6195 = vmatmul.mubr.msk.f32.vlgmr.msra.gmra.mrb[2].mxu0 %vm2399_vm15, %v6194_v56 }
 0x404   : > { %6376 = vmatpush3.msra.mxu1 %v7145_v24  ;;  %6377 = vmatprep.mubr.msk.f32.mxu1 %vm6591_vm6, %v7157_v58 }
 0x405   : > { %6380 = vmatprep.subr.mxu1 %v7157_v58  ;;  %3929 = vmatprep.mubr.f32.mxu0 %v7157_v58 }
 0x407   : > { %6378 = vmatmul.mubr.msk.f32.vlgmr.msra.gmra.mrb[30].mxu1 %vm2399_vm15, %v6188_v46 }
 0x408   : > { %6381 = vmatpush3.msra.mxu1 %v7151_v29  ;;  %6382 = vmatprep.mubr.msk.f32.mxu1 %vm6591_vm6, %v7157_v58 }
 0x409   : > { %6385 = vmatprep.subr.mxu1 %v7157_v58 }
 0x40b   : > { %6383 = vmatmul.mubr.msk.f32.vlgmr.msra.gmra.mrb[32].mxu1 %vm2399_vm15, %v6191_v53 }
 0x40c   : > { %6386 = vmatpush3.msra.mxu1 %v7160_v36  ;;  %6387 = vmatprep.mubr.msk.f32.mxu1 %vm6591_vm6, %v7157_v58  ;;  %v3849_v36 = vpop.permute.xlu0 %3848 }
 0x40d   : > { %6390 = vmatprep.subr.mxu1 %v7157_v58 }
 0x40f   : > { %6388 = vmatmul.mubr.msk.f32.vlgmr.msra.gmra.mrb[34].mxu1 %vm2399_vm15, %v6194_v56 }
 0x410   : > { %6392 = vmatprep.mubr.msk.f32.mxu1 %vm6591_vm6, %v7157_v58 }
 0x4c2   : > { %v2540_v55 = vpop.f32.mrb[18].mxu1 }
 0x4c3   : > { %v6349_v57 = vpop.f32.mrb[19].mxu1 }
 0x4c4   : > { %v6202_v57 = vld [vmem:[%s7549_s5 + $0x10] sm:$0xff] }
 0x4c6   : > { %v2699_v59 = vpop.f32.mrb[20].mxu1 }
 0x4c7   : > { %v2700_v60 = vadd.f32 %v2699_v59, %v2540_v55  ;;  %v6354_v61 = vpop.f32.mrb[21].mxu1 }
 0x4ca   : > { %v2859_v62 = vpop.f32.mrb[22].mxu1 }
 0x4cb   : > { %v2865_v63 = vadd.f32 %v2859_v62, %v2700_v60  ;;  %v6359_v0 = vpop.f32.mrb[23].mxu1 }
 0x4ce   : > { %v3022_v1 = vpop.f32.mrb[24].mxu1 }
 0x4cf   : > { %v3028_v4 = vadd.f32 %v3022_v1, %v2865_v63  ;;  %v6364_v2 = vpop.f32.mrb[25].mxu1 }
 0x4d2   : > { %v3171_v3 = vpop.f32.mrb[26].mxu1 }
 0x4d3   : > { %v3177_v5 = vadd.f32 %v3171_v3, %v3028_v4  ;;  %v6369_v6 = vpop.f32.mrb[27].mxu1  ;;  %v6205_v4 = vld [vmem:[%s7549_s5 + $0x18] sm:$0xff] }
 0x4d6   : > { %v3741_v8 = vpop.f32.mrb[2].mxu0  ;;  %v3331_v9 = vpop.f32.mrb[28].mxu1 }
 0x4d7   : > { %v7242_v10 = vadd.f32 %v3823_v7, %v3741_v8  ;;  %v3743_v11 = vpop.f32.mrb[3].mxu0  ;;  %v3337_v12 = vadd.f32 %v3331_v9, %v3177_v5  ;;  %v6374_v14 = vpop.f32.mrb[29].mxu1  ;;  %v6208_v8 = vld [vmem:[%s7549_s5 + $0x20] sm:$0xff] }
 0x4d8   : > { %v7244_v15 = vadd.f32 %v3823_v7, %v3743_v11 }
 0x4d9   : > { %v3828_v16 = vmax.f32 %v7242_v10, 0.0 }
 0x4da   : > { %v3829_v17 = vmax.f32 %v7244_v15, 0.0  ;;  %v3492_v18 = vpop.f32.mrb[30].mxu1 }
 0x4db   : > { %v3831_v19 = vsel %vm7008_vm11, %v3828_v16, 0.0  ;;  %v3498_v20 = vadd.f32 %v3492_v18, %v3337_v12  ;;  %v6379_v21 = vpop.f32.mrb[31].mxu1 }
 0x4dc   : > { %v3832_v22 = vsel %vm7015_vm13, %v3829_v17, 0.0  ;;  %3850 = vrot.lane.b32.xlu1 %v3831_v19, %s6574_s20  ;;  %v6214_v21 = vld [vmem:[%s7549_s5 + $0x30] sm:$0xff] }
 0x4dd   : > { %4010 = vrot.lane.b32.xlu0 %v3832_v22, %s6593_s22 }
 0x4de   : > { %v3652_v23 = vpop.f32.mrb[32].mxu1 }
 0x4df   : > { %v3658_v24 = vadd.f32 %v3652_v23, %v3498_v20  ;;  %v6384_v25 = vpop.f32.mrb[33].mxu1 }
 0x4e0   : > { %3852 = vrot.lane.b32.xlu1 %v3832_v22, %s6574_s20  ;;  %v6217_v25 = vld [vmem:[%s7549_s5 + $0x38] sm:$0xff] }
 0x4e1   : > { %4168 = vrot.lane.b32.xlu0 %v3831_v19, %s6587_s25 }
 0x4e2   : > { %v3812_v26 = vpop.f32.mrb[34].mxu1 }
 0x4e3   : > { %v3818_v28 = vadd.f32 %v3812_v26, %v3658_v24  ;;  %v6389_v29 = vpop.f32.mrb[35].mxu1 }
 0x4e4   : > { %4008 = vrot.lane.b32.xlu1 %v3831_v19, %s6593_s22 }
 0x4e5   : > { %v3827_v27 = vadd.f32 %v3823_v7, %v3818_v28  ;;  %4166 = vrot.lane.b32.xlu0 %v7157_v58, %s6587_s25  ;;  %v6220_v28 = vld [vmem:[%s7549_s5 + $0x40] sm:$0xff] }
 0x4e7   : > { %v3830_v30 = vmax.f32 %v3827_v27, 0.0 }
 0x4e8   : > { %4006 = vrot.lane.b32.xlu1 %v7157_v58, %s6593_s22 }
 0x4e9   : > { %v3833_v32 = vsel %vm7036_vm5, %v3830_v30, 0.0  ;;  %4333 = vrot.lane.b32.xlu0 %v3832_v22, %s6571_s18  ;;  %v5962_v30 = vld [vmem:[%s6667_s10] sm:$0xff]  ;;  %s6595_s10 = smov 4  }
 0x4ea   : > { %3836 = vst.msk [vmem:[#allocation4 + $0x18] sm:$0xff] %vm2372_vm14, %v3833_v32  ;;  %v5965_v32 = vcombine.high %v5962_v30, %v5962_v30 }
 0x4ec   : > { %4170 = vrot.lane.b32.xlu1 %v3832_v22, %s6587_s25 }
 0x4f0   : > { %4331 = vrot.lane.b32.xlu1 %v3831_v19, %s6571_s18 }
 0x4f1   : > { %v7271_v34 = vld [vmem:[#allocation4 + $0x18] sm:$0xff] }
 0x4f2   : > { %3854 = vrot.lane.b32.xlu0 %v7271_v34, %s6574_s20  ;;  %s6597_s20 = smov 2  }
 0x4f4   : > { %4329 = vrot.lane.b32.xlu1 %v7157_v58, %s6571_s18 }
 0x4f6   : > { %4641 = vrot.lane.b32.xlu0 %v3831_v19, %s6588_s26 }
 0x4f8   : > { %4012 = vrot.lane.b32.xlu1 %v7271_v34, %s6593_s22  ;;  %s6601_s22 = smov 20  }
 0x4fa   : > { %4643 = vrot.lane.b32.xlu0 %v3832_v22, %s6588_s26 }
 0x4fc   : > { %4645 = vrot.lane.b32.xlu1 %v7271_v34, %s6588_s26  ;;  %s6599_s26 = smov 56  }
 0x4fe   : > { %4335 = vrot.lane.b32.xlu0 %v7271_v34, %s6571_s18  ;;  %s6596_s18 = smov 92  }
 0x500   : > { %4172 = vrot.lane.b32.xlu1 %v7271_v34, %s6587_s25  ;;  %s6598_s25 = smov 74  }
 0x502   : > { %4805 = vrot.lane.b32.xlu0 %v7271_v34, %s6594_s19 }
 0x504   : > { %4803 = vrot.lane.b32.xlu1 %v3832_v22, %s6594_s19 }
 0x506   : > { %4963 = vrot.lane.b32.xlu0 %v3832_v22, %s6589_s29 }
 0x508   : > { %4801 = vrot.lane.b32.xlu1 %v3831_v19, %s6594_s19  ;;  %s6602_s19 = smov 94  }
 0x50a   : > { %4961 = vrot.lane.b32.xlu0 %v3831_v19, %s6589_s29 }
 0x50c   : > { %4965 = vrot.lane.b32.xlu1 %v7271_v34, %s6589_s29 }
 0x50e   : > { %5125 = vrot.lane.b32.xlu0 %v7271_v34, %s6590_s30 }
 0x510   : > { %5123 = vrot.lane.b32.xlu1 %v3832_v22, %s6590_s30 }
 0x512   : > { %5282 = vperm.xlu0 %6544, %v5279_v52  }
 0x514   : > { %5121 = vrot.lane.b32.xlu1 %v3831_v19, %s6590_s30  ;;  %s6600_s30 = smov 38  }
 0x54e   : > { %v3851_v37 = vpop.permute.xlu1 %3850 }
 0x54f   : > { %v4011_v38 = vpop.permute.xlu0 %4010  ;;  %v3856_v42 = vsel %vm749_vm2, %v3849_v36, %v3851_v37 }
 0x552   : > { %v3853_v39 = vpop.permute.xlu1 %3852 }
 0x553   : > { %v3857_v40 = vsel %vm749_vm2, %v3851_v37, %v3853_v39  ;;  %v4169_v43 = vpop.permute.xlu0 %4168 }
 0x554   : > { %3865 = vmatprep.subr.mxu0 %v3857_v40 }
 0x555   : > { %3866 = vmatpush1.msra.mxu0 %v3856_v42 }
 0x556   : > { %v4009_v44 = vpop.permute.xlu1 %4008  ;;  %6198 = vmatmul.mubr.msk.f32.vlgmr.msra.gmra.mrb[4].mxu0 %vm2399_vm15, %v6197_v41 }
 0x557   : > { %v4015_v45 = vsel %vm2552_vm3, %v4009_v44, %v4011_v38  ;;  %4087 = vmatprep.mubr.f32.mxu0 %v7157_v58  ;;  %v4167_v46 = vpop.permute.xlu0 %4166 }
 0x558   : > { %4023 = vmatprep.subr.mxu0 %v4015_v45  ;;  %v4174_v53 = vsel %vm544_vm1, %v4167_v46, %v4169_v43 }
 0x55a   : > { %v4007_v47 = vpop.permute.xlu1 %4006 }
 0x55b   : > { %v4014_v48 = vsel %vm2552_vm3, %v4007_v47, %v4009_v44  ;;  %v4334_v54 = vpop.permute.xlu0 %4333 }
 0x55c   : > { %4024 = vmatpush1.msra.mxu0 %v4014_v48 }
 0x55e   : > { %v4171_v50 = vpop.permute.xlu1 %4170  ;;  %6200 = vmatmul.mubr.msk.f32.vlgmr.msra.gmra.mrb[4].mxu0 %vm2399_vm15, %v3841_v49 }
 0x55f   : > { %v4175_v51 = vsel %vm544_vm1, %v4169_v43, %v4171_v50  ;;  %4247 = vmatprep.mubr.f32.mxu0 %v7157_v58 }
 0x560   : > { %4183 = vmatprep.subr.mxu0 %v4175_v51 }
 0x561   : > { %4184 = vmatpush1.msra.mxu0 %v4174_v53 }
 0x562   : > { %v4332_v56 = vpop.permute.xlu1 %4331 }
 0x563   : > { %v4338_v55 = vsel %vm535_vm0, %v4332_v56, %v4334_v54 }
 0x564   : > { %v3855_v59 = vpop.permute.xlu0 %3854  ;;  %4346 = vmatprep.subr.mxu0 %v4338_v55 }
 0x565   : > { %v3858_v60 = vsel %vm749_vm2, %v3853_v39, %v3855_v59  ;;  %vm7564_vm2 = vcmask 130048  }
 0x566   : > { %6391 = vmatpush3.msra.mxu1 %v3858_v60  ;;  %v4330_v61 = vpop.permute.xlu1 %4329  ;;  %6203 = vmatmul.mubr.msk.f32.vlgmr.msra.gmra.mrb[4].mxu0 %vm2399_vm15, %v6202_v57 }
 0x567   : > { %v4337_v62 = vsel %vm535_vm0, %v4330_v61, %v4332_v56  ;;  %6395 = vmatprep.subr.mxu1 %v7157_v58  ;;  %6393 = vmatmul.mubr.msk.f32.vlgmr.msra.gmra.mrb[36].mxu1 %vm2399_vm15, %v6197_v41 }
 0x568   : > { %v4642_v63 = vpop.permute.xlu0 %4641  ;;  %4347 = vmatpush1.msra.mxu0 %v4337_v62  ;;  %4410 = vmatprep.mubr.f32.mxu0 %v7157_v58 }
 0x569   : > { %6552 = vmatprep.subr.msk.mxu0 %vm7015_vm13, %v3829_v17  ;;  %6397 = vmatprep.mubr.msk.f32.mxu1 %vm6591_vm6, %v7157_v58 }
 0x56a   : > { %v4013_v0 = vpop.permute.xlu1 %4012 }
 0x56b   : > { %v4016_v1 = vsel %vm2552_vm3, %v4011_v38, %v4013_v0 }
 0x56c   : > { %v4644_v2 = vpop.permute.xlu0 %4643  ;;  %6396 = vmatpush3.msra.mxu1 %v4016_v1 }
 0x56d   : > { %6398 = vmatmul.mubr.msk.f32.vlgmr.msra.gmra.mrb[38].mxu1 %vm2399_vm15, %v3841_v49  ;;  %6400 = vmatprep.subr.mxu1 %v7157_v58  ;;  %v4647_v31 = vsel %vm1519_vm9, %v4642_v63, %v4644_v2 }
 0x56e   : > { %v4646_v3 = vpop.permute.xlu1 %4645  ;;  %6206 = vmatmul.mubr.msk.f32.vlgmr.msra.gmra.mrb[4].mxu0 %vm2399_vm15, %v6205_v4  ;;  %6402 = vmatprep.mubr.msk.f32.mxu1 %vm6591_vm6, %v7157_v58 }
 0x56f   : > { %6553 = vmatpush1.msk.msra.mxu0 %vm7008_vm11, %v3828_v16  ;;  %v4648_v35 = vsel %vm1519_vm9, %v4644_v2, %v4646_v3  ;;  %4559 = vmatprep.mubr.f32.mxu0 %v7157_v58  ;;  %v6211_v16 = vld [vmem:[%s7549_s5 + $0x28] sm:$0xff]  ;;  %vm7565_vm9 = vmmov %vm7564_vm2 }
 0x570   : > { %v4336_v5 = vpop.permute.xlu0 %4335  ;;  %4655 = vmatprep.subr.mxu0 %v4648_v35 }
 0x571   : > { %v4339_v10 = vsel %vm535_vm0, %v4334_v54, %v4336_v5  ;;  %vm5312_vm0 = vcmask 15360  }
 0x572   : > { %v4173_v6 = vpop.permute.xlu1 %4172 }
 0x573   : > { %v4176_v7 = vsel %vm544_vm1, %v4171_v50, %v4173_v6  ;;  %vm5945_vm1 = vcmask 392192  }
 0x574   : > { %v4806_v9 = vpop.permute.xlu0 %4805  ;;  %6401 = vmatpush3.msra.mxu1 %v4176_v7 }
 0x575   : > { %6403 = vmatmul.mubr.msk.f32.vlgmr.msra.gmra.mrb[40].mxu1 %vm2399_vm15, %v6202_v57  ;;  %6405 = vmatprep.subr.mxu1 %v7157_v58 }
 0x576   : > { %v4804_v11 = vpop.permute.xlu1 %4803  ;;  %6406 = vmatpush3.msra.mxu1 %v4339_v10  ;;  %6209 = vmatmul.mubr.msk.f32.vlgmr.msra.gmra.mrb[4].mxu0 %vm2399_vm15, %v6208_v8 }
 0x577   : > { %4656 = vmatpush1.msra.mxu0 %v4647_v31  ;;  %6407 = vmatprep.mubr.msk.f32.mxu1 %vm6591_vm6, %v7157_v58  ;;  %v4808_v12 = vsel %vm3346_vm4, %v4804_v11, %v4806_v9 }
 0x578   : > { %6410 = vmatprep.subr.mxu1 %v7157_v58  ;;  %4815 = vmatprep.subr.mxu0 %v4808_v12  ;;  %v4964_v14 = vpop.permute.xlu0 %4963 }
 0x579   : > { %6408 = vmatmul.mubr.msk.f32.vlgmr.msra.gmra.mrb[42].mxu1 %vm2399_vm15, %v6205_v4  ;;  %4719 = vmatprep.mubr.f32.mxu0 %v7157_v58 }
 0x57a   : > { %6411 = vmatpush3.msra.mxu1 %v7271_v34  ;;  %v4802_v15 = vpop.permute.xlu1 %4801  ;;  %6412 = vmatprep.mubr.msk.f32.mxu1 %vm6591_vm6, %v7157_v58  ;;  %v5963_v34 = vld [vmem:[%s7551_s7] sm:$0xff] }
 0x57b   : > { %6415 = vmatprep.subr.mxu1 %v7157_v58  ;;  %v4807_v17 = vsel %vm3346_vm4, %v4802_v15, %v4804_v11  ;;  %vm5947_vm4 = vcmask 523264  }
 0x57c   : > { %v4962_v20 = vpop.permute.xlu0 %4961 }
 0x57d   : > { %6413 = vmatmul.mubr.msk.f32.vlgmr.msra.gmra.mrb[44].mxu1 %vm2399_vm15, %v6208_v8  ;;  %v4967_v23 = vsel %vm1856_vm10, %v4962_v20, %v4964_v14 }
 0x57e   : > { %6416 = vmatpush3.msra.mxu1 %v4646_v3  ;;  %v4966_v18 = vpop.permute.xlu1 %4965  ;;  %6212 = vmatmul.mubr.msk.f32.vlgmr.msra.gmra.mrb[4].mxu0 %vm2399_vm15, %v6211_v16 }
 0x57f   : > { %4816 = vmatpush1.msra.mxu0 %v4807_v17  ;;  %6417 = vmatprep.mubr.msk.f32.mxu1 %vm6591_vm6, %v7157_v58  ;;  %v4968_v19 = vsel %vm1856_vm10, %v4964_v14, %v4966_v18 }
 0x580   : > { %6420 = vmatprep.subr.mxu1 %v7157_v58  ;;  %4975 = vmatprep.subr.mxu0 %v4968_v19  ;;  %v5126_v24 = vpop.permute.xlu0 %5125 }
 0x581   : > { %6418 = vmatmul.mubr.msk.f32.vlgmr.msra.gmra.mrb[46].mxu1 %vm2399_vm15, %v6211_v16  ;;  %4879 = vmatprep.mubr.f32.mxu0 %v7157_v58 }
 0x582   : > { %6421 = vmatpush3.msra.mxu1 %v4806_v9  ;;  %6422 = vmatprep.mubr.msk.f32.mxu1 %vm6591_vm6, %v7157_v58  ;;  %v5124_v22 = vpop.permute.xlu1 %5123 }
 0x583   : > { %6425 = vmatprep.subr.mxu1 %v7157_v58  ;;  %v5128_v26 = vsel %vm2025_vm12, %v5124_v22, %v5126_v24 }
 0x585   : > { %6423 = vmatmul.mubr.msk.f32.vlgmr.msra.gmra.mrb[48].mxu1 %vm2399_vm15, %v6214_v21 }
 0x586   : > { %6426 = vmatpush3.msra.mxu1 %v4966_v18  ;;  %6215 = vmatmul.mubr.msk.f32.vlgmr.msra.gmra.mrb[4].mxu0 %vm2399_vm15, %v6214_v21  ;;  %v5122_v29 = vpop.permute.xlu1 %5121 }
 0x587   : > { %4976 = vmatpush1.msra.mxu0 %v4967_v23  ;;  %6427 = vmatprep.mubr.msk.f32.mxu1 %vm6591_vm6, %v7157_v58  ;;  %v5127_v27 = vsel %vm2025_vm12, %v5122_v29, %v5124_v22 }
 0x588   : > { %5135 = vmatprep.subr.mxu0 %v5128_v26  ;;  %6430 = vmatprep.subr.mxu1 %v7157_v58 }
 0x589   : > { %6428 = vmatmul.mubr.msk.f32.vlgmr.msra.gmra.mrb[50].mxu1 %vm2399_vm15, %v6217_v25  ;;  %5039 = vmatprep.mubr.f32.mxu0 %v7157_v58 }
 0x58a   : > { %6431 = vmatpush3.msra.mxu1 %v5126_v24  ;;  %6432 = vmatprep.mubr.msk.f32.mxu1 %vm6591_vm6, %v7157_v58  ;;  %vm5949_vm6 = vcmask 654336  }
 0x58d   : > { %6433 = vmatmul.mubr.msk.f32.vlgmr.msra.gmra.mrb[52].mxu1 %vm2399_vm15, %v6220_v28 }
 0x58e   : > { %6218 = vmatmul.mubr.msk.f32.vlgmr.msra.gmra.mrb[4].mxu0 %vm2399_vm15, %v6217_v25 }
 0x58f   : > { %5136 = vmatpush1.msra.mxu0 %v5127_v27  ;;  %5199 = vmatprep.mubr.f32.mxu0 %v7157_v58 }
 0x590   : > { %6239 = vmatprep.subr.msk.mxu0 %vm865_vm7, %v5965_v32 }
 0x591   : > { %v5283_v62 = vpop.permute.xlu0 %5282 }
 0x596   : > { %6221 = vmatmul.mubr.msk.f32.vlgmr.msra.gmra.mrb[4].mxu0 %vm2399_vm15, %v6220_v28 }
 0x597   : > { %6037 = vmatprep.mubr.f32.mxu0 %v7157_v58  ;;  %6240 = vmatpush1.msk.msra.mxu0 %vm865_vm7, %v5962_v30  ;;  %vm5951_vm7 = vcmask 785408  }
 0x59a   : > { %6241 = vmatmul.mubr.msk.f32.vlgmr.msra.gmra.mrb[6].mxu0 %vm861_vm8, %v5963_v34 }
 0x63a   : > { %v4002_v52 = vpop.f32.mrb[36].mxu1 }
 0x63b   : > { %v6394_v36 = vpop.f32.mrb[37].mxu1 }
 0x640   : > { %v4160_v37 = vpop.f32.mrb[38].mxu1 }
 0x641   : > { %v4161_v38 = vadd.f32 %v4160_v37, %v4002_v52  ;;  %v6399_v39 = vpop.f32.mrb[39].mxu1 }
 0x648   : > { %v4320_v40 = vpop.f32.mrb[40].mxu1 }
 0x649   : > { %v4326_v41 = vadd.f32 %v4320_v40, %v4161_v38  ;;  %v6404_v58 = vpop.f32.mrb[41].mxu1 }
 0x64c   : > { %v4483_v42 = vpop.f32.mrb[42].mxu1 }
 0x64d   : > { %v4489_v43 = vadd.f32 %v4483_v42, %v4326_v41  ;;  %v6409_v44 = vpop.f32.mrb[43].mxu1 }
 0x650   : > { %v4632_v45 = vpop.f32.mrb[44].mxu1 }
 0x651   : > { %v4638_v46 = vadd.f32 %v4632_v45, %v4489_v43  ;;  %v6414_v47 = vpop.f32.mrb[45].mxu1 }
 0x654   : > { %v4792_v48 = vpop.f32.mrb[46].mxu1 }
 0x655   : > { %v4798_v49 = vadd.f32 %v4792_v48, %v4638_v46  ;;  %v6419_v50 = vpop.f32.mrb[47].mxu1 }
 0x658   : > { %v4952_v51 = vpop.f32.mrb[48].mxu1 }
 0x659   : > { %v4958_v53 = vadd.f32 %v4952_v51, %v4798_v49  ;;  %v6424_v54 = vpop.f32.mrb[49].mxu1 }
 0x65c   : > { %v5112_v56 = vpop.f32.mrb[50].mxu1 }
 0x65d   : > { %v5118_v55 = vadd.f32 %v5112_v56, %v4958_v53  ;;  %v6429_v57 = vpop.f32.mrb[51].mxu1 }
 0x660   : > { %v5272_v59 = vpop.f32.mrb[52].mxu1 }
 0x661   : > { %v5278_v60 = vadd.f32 %v5272_v59, %v5118_v55  ;;  %v6434_v61 = vpop.f32.mrb[53].mxu1 }
 0x663   : > { %v5287_v63 = vadd.f32 %v5283_v62, %v5278_v60 }
 0x665   : > { %5336 = vrot.lane.b32.xlu1 %v5287_v63, %s6595_s10 }
 0x669   : > { %v5201_v0 = vpop.f32.mrb[4].mxu0 }
 0x66a   : > { %v5285_v1 = vadd.f32 %v5283_v62, %v5201_v0  ;;  %v5203_v4 = vpop.f32.mrb[5].mxu0 }
 0x66b   : > { %v5286_v2 = vadd.f32 %v5283_v62, %v5203_v4 }
 0x66c   : > { %5292 = vrot.lane.b32.xlu0 %v5285_v1, %s6596_s18  ;;  %5289 = vrot.lane.b32.xlu1 %v5285_v1, %s6589_s29  ;;  %s6605_s29 = smov 40  }
 0x670   : > { %5308 = vrot.lane.b32.xlu0 %v5285_v1, %s6597_s20  ;;  %5295 = vrot.lane.b32.xlu1 %v5285_v1, %s6598_s25 }
 0x674   : > { %5298 = vrot.lane.b32.xlu0 %v5285_v1, %s6599_s26  ;;  %5301 = vrot.lane.b32.xlu1 %v5285_v1, %s6600_s30 }
 0x678   : > { %5304 = vrot.lane.b32.xlu0 %v5285_v1, %s6601_s22  ;;  %5318 = vrot.lane.b32.xlu1 %v5286_v2, %s6602_s19 }
 0x67c   : > { %5315 = vrot.lane.b32.xlu0 %v5286_v2, %s6563_s12  ;;  %5324 = vrot.lane.b32.xlu1 %v5286_v2, %s6603_s21 }
 0x680   : > { %5321 = vrot.lane.b32.xlu0 %v5286_v2, %s6604_s24  ;;  %5310 = vrot.lane.b32.xlu1 %v5286_v2, %s6597_s20 }
 0x684   : > { %5334 = vrot.lane.b32.xlu0 %v5286_v2, %s6595_s10  ;;  %5327 = vrot.lane.b32.xlu1 %v5286_v2, %s6605_s29 }
 0x688   : > { %5330 = vrot.lane.b32.xlu0 %v5286_v2, %s6606_s23  ;;  %5340 = vrot.lane.b32.xlu1 %v5287_v63, %s6607_s9 }
 0x6d7   : > { %v7418_v3 = vpop.permute.xlu1 %5336 }
 0x6de   : > { %v5293_v35 = vpop.permute.xlu0 %5292  ;;  %v5290_v5 = vpop.permute.xlu1 %5289 }
 0x6df   : > { %v5343_v6 = vcombine.low %v5285_v1, %v5293_v35  ;;  %v5344_v7 = vcombine.high %v5285_v1, %v5293_v35 }
 0x6e1   : > { %v5351_v11 = vrot.slane %v5343_v6, %v6678_v13  ;;  %v5358_v12 = vrot.slane %v5344_v7, %v6678_v13 }
 0x6e2   : > { %v5309_v8 = vpop.permute.xlu0 %5308  ;;  %v5296_v9 = vpop.permute.xlu1 %5295 }
 0x6e3   : > { %v5359_v10 = vcombine.low %v5290_v5, %v5296_v9  ;;  %v5360_v31 = vcombine.high %v5290_v5, %v5296_v9 }
 0x6e5   : > { %v5367_v14 = vrot.slane %v5359_v10, %v6678_v13  ;;  %v5374_v15 = vrot.slane %v5360_v31, %v6678_v13 }
 0x6e6   : > { %v5299_v16 = vpop.permute.xlu0 %5298  ;;  %v5302_v17 = vpop.permute.xlu1 %5301 }
 0x6e7   : > { %v5407_v18 = vcombine.low %v5351_v11, %v5367_v14  ;;  %v5408_v19 = vcombine.high %v5351_v11, %v5367_v14  ;;  %v5423_v20 = vcombine.low %v5358_v12, %v5374_v15  ;;  %v5424_v21 = vcombine.high %v5358_v12, %v5374_v15 }
 0x6e9   : > { %v5415_v22 = vrot.slane %v5407_v18, %v6682_v33  ;;  %v5422_v23 = vrot.slane %v5408_v19, %v6682_v33  ;;  %v5431_v24 = vrot.slane %v5423_v20, %v6682_v33  ;;  %v5438_v25 = vrot.slane %v5424_v21, %v6682_v33 }
 0x6ea   : > { %v5305_v26 = vpop.permute.xlu0 %5304  ;;  %v5319_v28 = vpop.permute.xlu1 %5318 }
 0x6eb   : > { %v6223_v29 = vcombine.low %v5415_v22, %v5422_v23  ;;  %v6225_v27 = vcombine.high %v5415_v22, %v5422_v23  ;;  %v6227_v30 = vcombine.low %v5431_v24, %v5438_v25  ;;  %v6229_v32 = vcombine.high %v5431_v24, %v5438_v25 }
 0x6ec   : > { %v5375_v38 = vcombine.low %v5299_v16, %v5305_v26  ;;  %v5376_v42 = vcombine.high %v5299_v16, %v5305_v26 }
 0x6ed   : > { %v5623_v34 = vrot.slane %v6223_v29, %v6678_v13  ;;  %v5639_v52 = vrot.slane %v6225_v27, %v6678_v13  ;;  %v5655_v36 = vrot.slane %v6227_v30, %v6678_v13  ;;  %v5671_v37 = vrot.slane %v6229_v32, %v6678_v13 }
 0x6ee   : > { %v5316_v39 = vpop.permute.xlu0 %5315  ;;  %v5325_v40 = vpop.permute.xlu1 %5324  ;;  %v5383_v49 = vrot.slane %v5375_v38, %v6678_v13  ;;  %v5390_v60 = vrot.slane %v5376_v42, %v6678_v13 }
 0x6ef   : > { %v5679_v41 = vcombine.low %v5623_v34, %v5639_v52  ;;  %v5711_v58 = vcombine.low %v5655_v36, %v5671_v37  ;;  %v5495_v43 = vcombine.low %v5319_v28, %v5325_v40  ;;  %v5680_v44 = vcombine.high %v5623_v34, %v5639_v52 }
 0x6f0   : > { %v5712_v45 = vcombine.high %v5655_v36, %v5671_v37  ;;  %v5496_v46 = vcombine.high %v5319_v28, %v5325_v40 }
 0x6f1   : > { %v7433_v47 = vrot.slane %v5679_v41, %v6682_v33  ;;  %v7436_v48 = vrot.slane %v5711_v58, %v6682_v33  ;;  %v5694_v53 = vrot.slane %v5680_v44, %v6682_v33  ;;  %v5503_v61 = vrot.slane %v5495_v43, %v6678_v13 }
 0x6f2   : > { %v5322_v50 = vpop.permute.xlu0 %5321  ;;  %v5311_v51 = vpop.permute.xlu1 %5310  ;;  %v5726_v54 = vrot.slane %v5712_v45, %v6682_v33  ;;  %v5510_v0 = vrot.slane %v5496_v46, %v6678_v13 }
 0x6f3   : > { %v5479_v56 = vcombine.low %v5316_v39, %v5322_v50  ;;  %v5480_v55 = vcombine.high %v5316_v39, %v5322_v50  ;;  %v5313_v57 = vsel %vm5312_vm0, %v5309_v8, %v5311_v51  ;;  %v5744_v59 = vcombine.high %v7433_v47, %v7436_v48 }
 0x6f4   : > { %v5391_v62 = vcombine.low %v5302_v17, %v5313_v57  ;;  %v5392_v63 = vcombine.high %v5302_v17, %v5313_v57  ;;  %v5743_v2 = vcombine.low %v7433_v47, %v7436_v48  ;;  %v5745_v8 = vcombine.low %v5694_v53, %v5726_v54 }
 0x6f5   : > { %v5487_v1 = vrot.slane %v5479_v56, %v6678_v13  ;;  %v5494_v4 = vrot.slane %v5480_v55, %v6678_v13  ;;  %5888 = vrot.lane.b32.xlu0 %v5744_v59, %s6568_s17  ;;  %v5746_v9 = vcombine.high %v5694_v53, %v5726_v54 }
 0x6f6   : > { %v5399_v35 = vrot.slane %v5391_v62, %v6678_v13  ;;  %v5406_v5 = vrot.slane %v5392_v63, %v6678_v13  ;;  %v5335_v6 = vpop.permute.xlu0 %5334  ;;  %v5328_v7 = vpop.permute.xlu1 %5327 }
 0x6f7   : > { %v5543_v10 = vcombine.low %v5487_v1, %v5503_v61  ;;  %v5544_v31 = vcombine.high %v5487_v1, %v5503_v61  ;;  %v5559_v11 = vcombine.low %v5494_v4, %v5510_v0  ;;  %v5560_v12 = vcombine.high %v5494_v4, %v5510_v0 }
 0x6f8   : > { %v5439_v14 = vcombine.low %v5383_v49, %v5399_v35  ;;  %v5440_v15 = vcombine.high %v5383_v49, %v5399_v35  ;;  %v5455_v16 = vcombine.low %v5390_v60, %v5406_v5  ;;  %v5456_v17 = vcombine.high %v5390_v60, %v5406_v5 }
 0x6f9   : > { %v5551_v18 = vrot.slane %v5543_v10, %v6682_v33  ;;  %v5558_v19 = vrot.slane %v5544_v31, %v6682_v33  ;;  %v5567_v20 = vrot.slane %v5559_v11, %v6682_v33  ;;  %v5574_v21 = vrot.slane %v5560_v12, %v6682_v33  ;;  %5892 = vrot.lane.b32.xlu0 %v5745_v8, %s6566_s15 }
 0x6fa   : > { %v5447_v22 = vrot.slane %v5439_v14, %v6682_v33  ;;  %v5454_v23 = vrot.slane %v5440_v15, %v6682_v33  ;;  %v5463_v24 = vrot.slane %v5455_v16, %v6682_v33  ;;  %v5470_v25 = vrot.slane %v5456_v17, %v6682_v33  ;;  %v5331_v36 = vpop.permute.xlu0 %5330  ;;  %v5341_v37 = vpop.permute.xlu1 %5340 }
 0x6fb   : > { %v6231_v26 = vcombine.low %v5551_v18, %v5558_v19  ;;  %v6233_v28 = vcombine.high %v5551_v18, %v5558_v19  ;;  %v6235_v29 = vcombine.low %v5567_v20, %v5574_v21  ;;  %v6237_v27 = vcombine.high %v5567_v20, %v5574_v21  ;;  %v7494_v17 = vpop.f32.mrb[6].mxu0 }
 0x6fc   : > { %v6224_v30 = vcombine.low %v5447_v22, %v5454_v23  ;;  %v6226_v32 = vcombine.high %v5447_v22, %v5454_v23  ;;  %v6228_v34 = vcombine.low %v5463_v24, %v5470_v25  ;;  %v6230_v52 = vcombine.high %v5463_v24, %v5470_v25 }
 0x6fd   : > { %v5759_v38 = vrot.slane %v6231_v26, %v6678_v13  ;;  %v5775_v39 = vrot.slane %v6233_v28, %v6678_v13  ;;  %v5791_v40 = vrot.slane %v6235_v29, %v6678_v13  ;;  %v5807_v41 = vrot.slane %v6237_v27, %v6678_v13  ;;  %5896 = vrot.lane.b32.xlu0 %v5746_v9, %s6567_s16 }
 0x6fe   : > { %v5630_v58 = vrot.slane %v6224_v30, %v6678_v13  ;;  %v5646_v42 = vrot.slane %v6226_v32, %v6678_v13  ;;  %v5662_v43 = vrot.slane %v6228_v34, %v6678_v13  ;;  %v5678_v44 = vrot.slane %v6230_v52, %v6678_v13 }
 0x6ff   : > { %v5338_v45 = vsel %vm861_vm8, %v5335_v6, %v7418_v3  ;;  %v5527_v46 = vcombine.low %v5331_v36, %v5341_v37  ;;  %v5528_v49 = vcombine.high %v5331_v36, %v5341_v37  ;;  %v5815_v50 = vcombine.low %v5759_v38, %v5775_v39 }
 0x700   : > { %v5511_v51 = vcombine.low %v5328_v7, %v5338_v45  ;;  %v5512_v53 = vcombine.high %v5328_v7, %v5338_v45  ;;  %v5847_v54 = vcombine.low %v5791_v40, %v5807_v41  ;;  %v5695_v56 = vcombine.low %v5630_v58, %v5646_v42 }
 0x701   : > { %v5535_v55 = vrot.slane %v5527_v46, %v6678_v13  ;;  %v5542_v57 = vrot.slane %v5528_v49, %v6678_v13  ;;  %v7477_v59 = vrot.slane %v5815_v50, %v6682_v33  ;;  %v5727_v60 = vcombine.low %v5662_v43, %v5678_v44 }
 0x702   : > { %v5519_v61 = vrot.slane %v5511_v51, %v6678_v13  ;;  %v5526_v62 = vrot.slane %v5512_v53, %v6678_v13  ;;  %v7482_v3 = vrot.slane %v5847_v54, %v6682_v33  ;;  %v5703_v63 = vrot.slane %v5695_v56, %v6682_v33 }
 0x703   : > { %v5735_v0 = vrot.slane %v5727_v60, %v6682_v33  ;;  %v5816_v1 = vcombine.high %v5759_v38, %v5775_v39  ;;  %v5848_v4 = vcombine.high %v5791_v40, %v5807_v41  ;;  %v5696_v35 = vcombine.high %v5630_v58, %v5646_v42  ;;  %v6041_v42 = vpop.f32.mrb[7].mxu0 }
 0x704   : > { %v5575_v5 = vcombine.low %v5519_v61, %v5535_v55  ;;  %v5576_v6 = vcombine.high %v5519_v61, %v5535_v55  ;;  %v5591_v7 = vcombine.low %v5526_v62, %v5542_v57  ;;  %v5592_v8 = vcombine.high %v5526_v62, %v5542_v57 }
 0x705   : > { %v5880_v9 = vcombine.high %v7477_v59, %v7482_v3  ;;  %v5747_v10 = vcombine.low %v5703_v63, %v5735_v0  ;;  %v5830_v31 = vrot.slane %v5816_v1, %v6682_v33  ;;  %v5862_v11 = vrot.slane %v5848_v4, %v6682_v33 }
 0x706   : > { %v5583_v12 = vrot.slane %v5575_v5, %v6682_v33  ;;  %v5590_v14 = vrot.slane %v5576_v6, %v6682_v33  ;;  %v5599_v15 = vrot.slane %v5591_v7, %v6682_v33  ;;  %v5606_v16 = vrot.slane %v5592_v8, %v6682_v33 }
 0x707   : > { %5916 = vrot.lane.b32.xlu1 %v5880_v9, %s6568_s17  ;;  %5900 = vrot.lane.b32.xlu0 %v5747_v10, %s6564_s13  ;;  %v5881_v18 = vcombine.low %v5830_v31, %v5862_v11  ;;  %v5748_v23 = vcombine.high %v5703_v63, %v5735_v0  ;;  %v5710_v24 = vrot.slane %v5696_v35, %v6682_v33  ;;  %vm5953_vm8 = vcmask 916480  }
 0x708   : > { %v6232_v19 = vcombine.low %v5583_v12, %v5590_v14  ;;  %v6234_v20 = vcombine.high %v5583_v12, %v5590_v14  ;;  %v6236_v21 = vcombine.low %v5599_v15, %v5606_v16  ;;  %v6238_v22 = vcombine.high %v5599_v15, %v5606_v16 }
 0x709   : > { %v5728_v25 = vcombine.high %v5662_v43, %v5678_v44  ;;  %v5879_v26 = vcombine.low %v7477_v59, %v7482_v3  ;;  %v5882_v36 = vcombine.high %v5830_v31, %v5862_v11 }
 0x70a   : > { %v5766_v28 = vrot.slane %v6232_v19, %v6678_v13  ;;  %v5782_v29 = vrot.slane %v6234_v20, %v6678_v13  ;;  %v5798_v27 = vrot.slane %v6236_v21, %v6678_v13  ;;  %v5814_v30 = vrot.slane %v6238_v22, %v6678_v13 }
 0x70b   : > { %5920 = vrot.lane.b32.xlu1 %v5881_v18, %s6566_s15  ;;  %5904 = vrot.lane.b32.xlu0 %v5748_v23, %s6562_s11  ;;  %v5742_v32 = vrot.slane %v5728_v25, %v6682_v33 }
 0x70c   : > { %v5831_v34 = vcombine.low %v5766_v28, %v5782_v29  ;;  %v5863_v52 = vcombine.low %v5798_v27, %v5814_v30  ;;  %v5832_v41 = vcombine.high %v5766_v28, %v5782_v29  ;;  %v5864_v58 = vcombine.high %v5798_v27, %v5814_v30 }
 0x70d   : > { %v5749_v37 = vcombine.low %v5710_v24, %v5742_v32  ;;  %v5750_v13 = vcombine.high %v5710_v24, %v5742_v32 }
 0x70e   : > { %v5839_v38 = vrot.slane %v5831_v34, %v6682_v33  ;;  %v5871_v39 = vrot.slane %v5863_v52, %v6682_v33  ;;  %v5846_v44 = vrot.slane %v5832_v41, %v6682_v33  ;;  %v5878_v45 = vrot.slane %v5864_v58, %v6682_v33 }
 0x70f   : > { %5924 = vrot.lane.b32.xlu1 %v5882_v36, %s6567_s16  ;;  %5908 = vrot.lane.b32.xlu0 %v5749_v37, %s6565_s14 }
 0x710   : > { %v5883_v40 = vcombine.low %v5839_v38, %v5871_v39  ;;  %v5884_v43 = vcombine.high %v5839_v38, %v5871_v39  ;;  %v5885_v46 = vcombine.low %v5846_v44, %v5878_v45  ;;  %v5886_v49 = vcombine.high %v5846_v44, %v5878_v45 }
 0x713   : > { %5928 = vrot.lane.b32.xlu1 %v5883_v40, %s6564_s13  ;;  %5912 = vrot.lane.b32.xlu0 %v5750_v13, %s6563_s12 }
 0x717   : > { %5932 = vrot.lane.b32.xlu1 %v5884_v43, %s6562_s11  ;;  %s6245_s11 = sshll.u32 %s7567_s28, 4 }
 0x71b   : > { %5936 = vrot.lane.b32.xlu1 %v5885_v46, %s6565_s14  ;;  %s305_s14 = scalar_lea.vmem %s7552_s8, %s6245_s11 }
 0x71f   : > { %5940 = vrot.lane.b32.xlu1 %v5886_v49, %s6563_s12 }
 0x767   : > { %v5889_v50 = vpop.permute.xlu0 %5888 }
 0x768   : > { %v5943_v33 = vsel %vm7564_vm2, %v5743_v2, %v5889_v50 }
 0x76b   : > { %v5893_v51 = vpop.permute.xlu0 %5892 }
 0x76c   : > { %v5944_v59 = vsel %vm2372_vm14, %v5943_v33, %v5893_v51 }
 0x76f   : > { %v5897_v53 = vpop.permute.xlu0 %5896 }
 0x770   : > { %v5946_v62 = vsel %vm5945_vm1, %v5944_v59, %v5897_v53 }
 0x779   : > { %v5917_v54 = vpop.permute.xlu1 %5916  ;;  %v5901_v56 = vpop.permute.xlu0 %5900 }
 0x77a   : > { %v5948_v3 = vsel %vm5947_vm4, %v5946_v62, %v5901_v56  ;;  %v5955_v5 = vsel %vm7565_vm9, %v5879_v26, %v5917_v54 }
 0x77d   : > { %v5921_v55 = vpop.permute.xlu1 %5920  ;;  %v5905_v57 = vpop.permute.xlu0 %5904 }
 0x77e   : > { %v5950_v63 = vsel %vm5949_vm6, %v5948_v3, %v5905_v57  ;;  %v5956_v6 = vsel %vm2372_vm14, %v5955_v5, %v5921_v55 }
 0x781   : > { %v5925_v60 = vpop.permute.xlu1 %5924  ;;  %v5909_v61 = vpop.permute.xlu0 %5908 }
 0x782   : > { %v5952_v0 = vsel %vm5951_vm7, %v5950_v63, %v5909_v61  ;;  %v5957_v8 = vsel %vm5945_vm1, %v5956_v6, %v5925_v60 }
 0x785   : > { %v5929_v1 = vpop.permute.xlu1 %5928  ;;  %v5913_v47 = vpop.permute.xlu0 %5912 }
 0x786   : > { %v5954_v48 = vsel %vm5953_vm8, %v5952_v0, %v5913_v47  ;;  %v5958_v9 = vsel %vm5947_vm4, %v5957_v8, %v5929_v1 }
 0x787   : > { %v6044_v2 = vadd.f32 %v7494_v17, %v5954_v48 }
 0x789   : > { %v6046_v4 = vmax.f32 %v6044_v2, 0.0  ;;  %v5933_v35 = vpop.permute.xlu1 %5932 }
 0x78a   : > { %v5959_v10 = vsel %vm5949_vm6, %v5958_v9, %v5933_v35 }
 0x78b   : > { %6048 = vst [vmem:[%s305_s14] sm:$0xff] %v6046_v4 }
 0x78d   : > { %v5937_v7 = vpop.permute.xlu1 %5936 }
 0x78e   : > { %v5960_v31 = vsel %vm5951_vm7, %v5959_v10, %v5937_v7 }
 0x791   : > { %v5941_v11 = vpop.permute.xlu1 %5940 }
 0x792   : > { %v5961_v12 = vsel %vm5953_vm8, %v5960_v31, %v5941_v11 }
 0x793   : > { %v6045_v14 = vadd.f32 %v6041_v42, %v5961_v12 }
 0x795   : > { %v6047_v15 = vmax.f32 %v6045_v14, 0.0 }
 0x797   : > { %6049 = vst [vmem:[%s305_s14 + $0x8] sm:$0xff] %v6047_v15 }
 0x798 PF: > { %s18_s27 = sadd.s32 1, %s6560_s27  }
 0x799   : > { %p15_p4 = scmp.ge.s32.totalorder %s18_s27, 4  }
 0x79b   :  { %17 = sbr.rel (!%p15_p4) target bundleno = 1 (0x1), region = 106 }

</bundles_post_ra>
